<compile_context>
chip_gen: v6e
topology: v6e:2x2x1
jax: 0.10.0
libtpu: 0.0.40
codegen_flags: <defaults>
</compile_context>

<pallas_src>
import math
from functools import partial

import jax
import jax.numpy as jnp
from jax.experimental import pallas as pl
from jax.experimental.pallas import tpu as pltpu


# MXU operand dtype (accumulation is always f32). Set to jnp.float32 for a
# strict-f32 path (exact parity checks).
COMPUTE_DTYPE = jnp.bfloat16
# 64 MiB: <= v7x physical VMEM, well above the 16/32 MiB scoped defaults.
VMEM_LIMIT = 64 * 1024 * 1024


def _round_up(x, m):
    return (x + m - 1) // m * m


# ----------------------------- in-kernel helpers -----------------------------

def _layernorm(x, w, b, eps=1e-5):
    mu = jnp.mean(x, axis=-1, keepdims=True)
    var = jnp.mean((x - mu) ** 2, axis=-1, keepdims=True)
    return (x - mu) * jax.lax.rsqrt(var + eps) * w + b


def _gelu(x):
    # exact (erf) GELU, matching nn.GELU() / activation='gelu'
    return 0.5 * x * (1.0 + jax.lax.erf(x * (1.0 / math.sqrt(2.0))))


# ----------------------- fused transformer encoder stack ---------------------
# Grid: (B, L).  Batch axis "parallel" (megacore), layer axis "arbitrary"
# (innermost).  The output (S, D) block keeps a constant index over L, so the
# activations stay resident in VMEM for the entire layer stack; weights stream
# through double-buffered VMEM via their L index_map.
#
# Stacked per-layer params:
#   wqkv (L,D,3D) bf16, bqkv (L,1,3D) f32, wo (L,D,D) bf16, w1 (L,D,H) bf16,
#   b1 (L,1,H) f32, w2 (L,H,D) bf16,
#   vecs (L,6,D) f32 = [b_o, ln1_w, ln1_b, b2, ln2_w, ln2_b]

def encoder_stack_kernel(x_ref, bias_ref,
                         wqkv_ref, bqkv_ref, wo_ref, w1_ref, b1_ref, w2_ref,
                         vecs_ref, out_ref, *, num_heads):
    layer = pl.program_id(1)

    @pl.when(layer == 0)
    def _():
        # seed the resident activation block from the embeddings
        out_ref[...] = x_ref[...]

    x = out_ref[...].astype(jnp.float32)                # (S, D), resident residual stream
    S, D = x.shape
    H = num_heads
    hd = D // H
    scale = 1.0 / math.sqrt(hd)
    cdt = wqkv_ref.dtype                                # MXU operand dtype

    # ---- fused QKV projection: one (S,D) @ (D,3D) MXU pass ----
    qkv = jnp.dot(x.astype(cdt), wqkv_ref[...],
                  preferred_element_type=jnp.float32) + bqkv_ref[...]      # (S, 3D) f32

    q = qkv[:, :D].reshape(S, H, hd)                    # head split = feature-dim reshape
    k = qkv[:, D:2 * D].reshape(S, H, hd)
    v = qkv[:, 2 * D:].reshape(S, H, hd)

    # ---- batched-head attention, additive key mask added once ----
    s = jnp.einsum('qhd,khd->hqk', q.astype(cdt), k.astype(cdt),
                   preferred_element_type=jnp.float32) * scale            # (H, S, S)
    s = s + bias_ref[...][None, :, :]                                      # (1,1,S) broadcast
    m = jnp.max(s, axis=-1, keepdims=True)
    p = jnp.exp(s - m)
    denom = jnp.sum(p, axis=-1, keepdims=True)
    p = p * pl.reciprocal(denom, approx=True)                              # EUP, not VPU div
    ctx = jnp.einsum('hqk,khd->qhd', p.astype(cdt), v.astype(cdt),
                     preferred_element_type=jnp.float32)                   # (S, H, hd)
    attn = ctx.reshape(S, D)                                               # head merge = reshape

    attn = jnp.dot(attn.astype(cdt), wo_ref[...],
                   preferred_element_type=jnp.float32) + vecs_ref[0]

    # ---- post-norm residual blocks (norm_first=False), dropout = identity ----
    h = _layernorm(x + attn, vecs_ref[1], vecs_ref[2])
    ff = _gelu(jnp.dot(h.astype(cdt), w1_ref[...],
                       preferred_element_type=jnp.float32) + b1_ref[...])
    ff = jnp.dot(ff.astype(cdt), w2_ref[...],
                 preferred_element_type=jnp.float32) + vecs_ref[3]
    h = _layernorm(h + ff, vecs_ref[4], vecs_ref[5])

    out_ref[...] = h.astype(out_ref.dtype)


def encoder_stack(x, bias, stacked_layers, num_heads):
    B, S, D = x.shape
    wqkv, bqkv, wo, w1, b1, w2, vecs = stacked_layers
    L = wqkv.shape[0]
    D3 = wqkv.shape[2]
    Hf = w1.shape[2]
    wmap = lambda b, l: (l, 0, 0)          # stream weights over the layer axis
    amap = lambda b, l: (b, 0, 0)          # activations / mask: constant over layers

    mm_flops = (2 * S * D * D3            # fused QKV
                + 4 * S * S * D           # scores + context
                + 2 * S * D * D           # out proj
                + 4 * S * D * Hf)         # FFN
    cost = pl.CostEstimate(
        flops=int(B * L * mm_flops),
        transcendentals=int(B * L * (num_heads * S * S + S * Hf)),
        bytes_accessed=int(
            sum(int(a.size) * a.dtype.itemsize
                for a in (x, bias, wqkv, bqkv, wo, w1, b1, w2, vecs))
            + int(x.size) * x.dtype.itemsize))

    return pl.pallas_call(
        partial(encoder_stack_kernel, num_heads=num_heads),
        out_shape=jax.ShapeDtypeStruct(x.shape, x.dtype),
        grid_spec=pltpu.PrefetchScalarGridSpec(
            num_scalar_prefetch=0,
            grid=(B, L),
            in_specs=[
                pl.BlockSpec((None, S, D), amap),    # input embeddings
                pl.BlockSpec((None, 1, S), amap),    # additive key mask
                pl.BlockSpec((None, D, D3), wmap),   # fused QKV weight (streamed over L)
                pl.BlockSpec((None, 1, D3), wmap),
                pl.BlockSpec((None, D, D), wmap),    # out proj
                pl.BlockSpec((None, D, Hf), wmap),   # ffn w1
                pl.BlockSpec((None, 1, Hf), wmap),
                pl.BlockSpec((None, Hf, D), wmap),   # ffn w2
                pl.BlockSpec((None, 6, D), wmap),    # packed bias/LN vectors
            ],
            out_specs=pl.BlockSpec((None, S, D), amap),   # resident across L (accumulator)
        ),
        compiler_params=pltpu.CompilerParams(
            dimension_semantics=("parallel", "arbitrary"),
            vmem_limit_bytes=VMEM_LIMIT),
        cost_estimate=cost,
    )(x, bias, wqkv, bqkv, wo, w1, b1, w2, vecs)


# ------------------------------- MLM head kernels -----------------------------
# Stage 1: tiny one-shot kernel computing h2 = LN(gelu(fc1(h_masked))).
# Stage 2: vocab-tiled logits matmul; h2 is a constant-index single-buffered
# block, the embedding-table tile streams, and the vocab axis is "parallel".

def mlm_transform_kernel(h_ref, fc1w_ref, vecs_ref, out_ref):
    h = h_ref[...].astype(jnp.float32)                                     # (B*M, D)
    z = jnp.dot(h.astype(fc1w_ref.dtype), fc1w_ref[...],
                preferred_element_type=jnp.float32) + vecs_ref[0]
    z = _layernorm(_gelu(z), vecs_ref[1], vecs_ref[2])
    out_ref[...] = z.astype(out_ref.dtype)


def mlm_transform(h_flat, fc1w, mlm_vecs):
    BM, D = h_flat.shape
    return pl.pallas_call(
        mlm_transform_kernel,
        out_shape=jax.ShapeDtypeStruct((BM, D), fc1w.dtype),
        in_specs=[pl.BlockSpec(memory_space=pltpu.MemorySpace.VMEM)] * 3,
        out_specs=pl.BlockSpec(memory_space=pltpu.MemorySpace.VMEM),
        compiler_params=pltpu.CompilerParams(vmem_limit_bytes=VMEM_LIMIT),
    )(h_flat, fc1w, mlm_vecs)


def mlm_logits_kernel(h2_ref, embT_ref, out_ref):
    out_ref[...] = jnp.dot(h2_ref[...], embT_ref[...],
                           preferred_element_type=jnp.float32).astype(out_ref.dtype)


def mlm_logits(h2, emb_T, tile_v):
    BM, D = h2.shape
    Vp = emb_T.shape[1]
    cost = pl.CostEstimate(
        flops=int(2 * BM * D * Vp),
        transcendentals=0,
        bytes_accessed=int(BM * D * h2.dtype.itemsize
                           + D * Vp * emb_T.dtype.itemsize
                           + BM * Vp * 4))
    return pl.pallas_call(
        mlm_logits_kernel,
        out_shape=jax.ShapeDtypeStruct((BM, Vp), jnp.float32),
        grid_spec=pltpu.PrefetchScalarGridSpec(
            num_scalar_prefetch=0,
            grid=(Vp // tile_v,),
            in_specs=[
                pl.BlockSpec((BM, D), lambda v: (0, 0),
                             pipeline_mode=pl.Buffered(1)),     # resident hidden states
                pl.BlockSpec((D, tile_v), lambda v: (0, v)),    # streamed vocab tile
            ],
            out_specs=pl.BlockSpec((BM, tile_v), lambda v: (0, v)),
        ),
        compiler_params=pltpu.CompilerParams(
            dimension_semantics=("parallel",),                  # no cross-tile dependency
            vmem_limit_bytes=VMEM_LIMIT),
        cost_estimate=cost,
    )(h2, emb_T)


# ------------------------------- pooling head kernel ---------------------------
# Grid over the batch axis ("parallel"); masked mean pool done as a
# (1,S) x (S,D) matmul; constant-index weight blocks are single-buffered.

def pool_head_kernel(enc_ref, nz_ref, fc2w_ref, fc2b_ref, clsw_ref, clsb_ref, out_ref):
    enc = enc_ref[...].astype(jnp.float32)                     # (S, D)
    nz = nz_ref[...].astype(jnp.float32)                       # (1, S)
    denom = jnp.maximum(jnp.sum(nz, axis=-1, keepdims=True), 1.0)   # no divide-by-zero NaN
    pooled = jnp.dot(nz, enc, preferred_element_type=jnp.float32) / denom   # (1, D)
    cdt = fc2w_ref.dtype
    h = jnp.maximum(jnp.dot(pooled.astype(cdt), fc2w_ref[...],
                            preferred_element_type=jnp.float32) + fc2b_ref[...], 0.0)
    out_ref[...] = (jnp.dot(h.astype(cdt), clsw_ref[...],
                            preferred_element_type=jnp.float32)
                    + clsb_ref[...]).astype(out_ref.dtype)


def pool_head(enc, nz, fc2w, fc2b, clsw, clsb):
    B, S, D = enc.shape
    Cp = clsw.shape[1]                                         # lane-dense padded classes
    const = lambda b: (0, 0)
    return pl.pallas_call(
        pool_head_kernel,
        out_shape=jax.ShapeDtypeStruct((B, 1, Cp), jnp.float32),
        grid_spec=pltpu.PrefetchScalarGridSpec(
            num_scalar_prefetch=0,
            grid=(B,),
            in_specs=[
                pl.BlockSpec((None, S, D), lambda b: (b, 0, 0)),   # streamed encoder output
                pl.BlockSpec((None, 1, S), lambda b: (b, 0, 0)),   # pooling weights
                pl.BlockSpec((D, D), const, pipeline_mode=pl.Buffered(1)),
                pl.BlockSpec((1, D), const, pipeline_mode=pl.Buffered(1)),
                pl.BlockSpec((D, Cp), const, pipeline_mode=pl.Buffered(1)),
                pl.BlockSpec((1, Cp), const, pipeline_mode=pl.Buffered(1)),
            ],
            out_specs=pl.BlockSpec((None, 1, Cp), lambda b: (b, 0, 0)),
        ),
        compiler_params=pltpu.CompilerParams(
            dimension_semantics=("parallel",),
            vmem_limit_bytes=VMEM_LIMIT),
    )(enc, nz, fc2w, fc2b, clsw, clsb)


# ------------------------------- parameter setup -------------------------------

def init_params(key, vocab_size, embed_dim, hidden_dim, num_layers, num_classes,
                compute_dtype=COMPUTE_DTYPE):
    D, Hf = embed_dim, hidden_dim
    keys = iter(jax.random.split(key, 8 * num_layers + 16))

    def kaiming(shape, fan_in):
        return jax.random.normal(next(keys), shape, jnp.float32) * math.sqrt(2.0 / fan_in)

    p = {}
    # Embedding(vocab, D, padding_idx=0) with kaiming_normal reset + zero pad row
    code_emb = kaiming((vocab_size, D), D).at[0].set(0.0)
    p['code_emb'] = code_emb
    # pre-transposed, vocab-padded (D, Vp) table for the MLM logits matmul
    Vp = _round_up(vocab_size, 128)
    tile_v = min(1024, Vp)
    Vp = _round_up(Vp, tile_v)
    p['tile_v'] = tile_v
    p['emb_T'] = jnp.zeros((D, Vp), compute_dtype).at[:, :vocab_size].set(
        code_emb.T.astype(compute_dtype))
    # nn.Embedding(51, D, padding_idx=50), default N(0,1) init, zero pad row
    p['visit_seg_emb'] = jax.random.normal(next(keys), (51, D), jnp.float32).at[50].set(0.0)
    # TimeEncoder params (definition not provided, see TODO in forward)
    p['time_w'] = jax.random.normal(next(keys), (D,), jnp.float32) * 0.02
    p['time_b'] = jnp.zeros((D,), jnp.float32)

    zD = jnp.zeros((D,), jnp.float32)
    oD = jnp.ones((D,), jnp.float32)
    wqkv_l, bqkv_l, wo_l, w1_l, b1_l, w2_l, vecs_l = [], [], [], [], [], [], []
    for _ in range(num_layers):
        wqkv_l.append(kaiming((D, 3 * D), D).astype(compute_dtype))   # fused in_proj (in, out)
        bqkv_l.append(jnp.zeros((1, 3 * D), jnp.float32))
        wo_l.append(kaiming((D, D), D).astype(compute_dtype))
        w1_l.append(kaiming((D, Hf), D).astype(compute_dtype))
        b1_l.append(jnp.zeros((1, Hf), jnp.float32))
        w2_l.append(kaiming((Hf, D), Hf).astype(compute_dtype))
        vecs_l.append(jnp.stack([zD, oD, zD, zD, oD, zD]))  # [b_o, ln1_w, ln1_b, b2, ln2_w, ln2_b]
    # stacked with a leading L axis for the fused encoder-stack kernel
    p['stacked_layers'] = tuple(
        jnp.stack(a) for a in (wqkv_l, bqkv_l, wo_l, w1_l, b1_l, w2_l, vecs_l))

    p['fc1_w'] = kaiming((D, D), D).astype(compute_dtype)
    p['mlm_vecs'] = jnp.stack([zD, oD, zD])                   # [fc1_b, ln_w, ln_b]
    p['fc2_w'] = kaiming((D, D), D).astype(compute_dtype)
    p['fc2_b'] = jnp.zeros((1, D), jnp.float32)
    Cp = _round_up(num_classes, 128)
    cls_w = kaiming((D, num_classes), D)
    p['cls_w'] = jnp.zeros((D, Cp), compute_dtype).at[:, :num_classes].set(
        cls_w.astype(compute_dtype))
    p['cls_b'] = jnp.zeros((1, Cp), jnp.float32)
    return p


# ------------------------------- full forward pass -----------------------------

def bert_forward(params, batch, num_heads, vocab_size, num_classes):
    ids = batch['masked_visit_seq']
    segs = batch['visit_segments']
    mask_f = batch['seq_mask'].astype(jnp.float32)            # 1.0 = padding position

    code_embs = jnp.take(params['code_emb'], ids, axis=0)     # (B, S, D)
    visit_seg = jnp.take(params['visit_seg_emb'], segs, axis=0)
    # TODO(synk): TimeEncoder source was not provided; using a deterministic
    # linear->tanh time embedding zeroed at padded positions as a stand-in.
    time_emb = jnp.tanh(batch['time_delta'][:, :, None] * params['time_w']
                        + params['time_b']) * (1.0 - mask_f[:, :, None])
    x = (code_embs + visit_seg + time_emb).astype(jnp.float32)

    # additive attention bias from src_key_padding_mask (True -> ignore key)
    bias = (mask_f * -1e9)[:, None, :]                        # (B, 1, S)

    # ---- fused encoder stack: one pallas_call, activations resident across L ----
    enc = encoder_stack(x, bias, params['stacked_layers'], num_heads)   # (B, S, D)

    # ---- MLM branch: gather masked positions, fc1 -> gelu -> LN -> @ emb.T ----
    h_masked = jnp.take_along_axis(enc, batch['mask_pos'][:, :, None], axis=1)
    B, M, D = h_masked.shape
    h2 = mlm_transform(h_masked.reshape(B * M, D), params['fc1_w'], params['mlm_vecs'])
    mlm_full = mlm_logits(h2, params['emb_T'], params['tile_v'])
    mlm_output = mlm_full.reshape(B, M, -1)[:, :, :vocab_size]

    # ---- pooling branch (pool_type='mean'): masked mean -> relu(fc2) -> cls ----
    ct = batch['code_types']
    nz = ((ct != 4) & (ct != 0)).astype(jnp.float32)[:, None, :]        # (B, 1, S)
    logits_full = pool_head(enc, nz, params['fc2_w'], params['fc2_b'],
                            params['cls_w'], params['cls_b'])
    logits_cls = logits_full[:, 0, :num_classes]
    return mlm_output, logits_cls


# ------------------------------------ main -------------------------------------

if __name__ == "__main__":
    vocab_size, embed_dim, num_heads, hidden_dim, num_layers = 100, 32, 4, 64, 2
    num_classes = 16
    B, S, M = 2, 8, 4

    key = jax.random.PRNGKey(0)
    kp, k1, k2, k3, k4, k5 = jax.random.split(key, 6)
    params = init_params(kp, vocab_size, embed_dim, hidden_dim, num_layers, num_classes)

    seq_mask = jnp.zeros((B, S), jnp.bool_).at[:, -2:].set(True)   # last 2 = padding
    batch = {
        'masked_visit_seq': jax.random.randint(k1, (B, S), 1, vocab_size),
        'visit_segments':   jax.random.randint(k2, (B, S), 0, 50),
        'time_delta':       jax.random.uniform(k3, (B, S), jnp.float32, 0.0, 10.0),
        'seq_mask':         seq_mask,
        'mask_pos':         jax.random.randint(k4, (B, M), 0, S - 2),
        'code_types':       jax.random.randint(k5, (B, S), 1, 4),
    }

    mlm_out, logits = bert_forward(params, batch, num_heads, vocab_size, num_classes)
    jax.block_until_ready((mlm_out, logits))

    assert mlm_out.shape == (B, M, vocab_size), mlm_out.shape
    assert logits.shape == (B, num_classes), logits.shape
    assert not bool(jnp.isnan(mlm_out).any()) and not bool(jnp.isnan(logits).any())
    print("KERNEL_OK")
</pallas_src>

<mosaic_0001>
module attributes {stable_mosaic.version = 11 : i64} {
  func.func @encoder_stack_kernel(%arg0: i32, %arg1: i32, %arg2: memref<1x8x32xf32, #tpu.memory_space<vmem>>, %arg3: memref<1x1x8xf32, #tpu.memory_space<vmem>>, %arg4: memref<1x32x96xbf16, #tpu.memory_space<vmem>>, %arg5: memref<1x1x96xf32, #tpu.memory_space<vmem>>, %arg6: memref<1x32x32xbf16, #tpu.memory_space<vmem>>, %arg7: memref<1x32x64xbf16, #tpu.memory_space<vmem>>, %arg8: memref<1x1x64xf32, #tpu.memory_space<vmem>>, %arg9: memref<1x64x32xbf16, #tpu.memory_space<vmem>>, %arg10: memref<1x6x32xf32, #tpu.memory_space<vmem>>, %arg11: memref<1x8x32xf32, #tpu.memory_space<vmem>>) attributes {dimension_semantics = [#tpu.dimension_semantics<parallel>, #tpu.dimension_semantics<arbitrary>], iteration_bounds = array<i64: 2, 2>, scalar_prefetch = 0 : i64, scratch_operands = 0 : i64, tpu.core_type = #tpu.core_type<tc>, window_params = [{transform_indices = @transform_0, window_bounds = array<i64: 1, 8, 32>}, {transform_indices = @transform_1, window_bounds = array<i64: 1, 1, 8>}, {transform_indices = @transform_2, window_bounds = array<i64: 1, 32, 96>}, {transform_indices = @transform_3, window_bounds = array<i64: 1, 1, 96>}, {transform_indices = @transform_4, window_bounds = array<i64: 1, 32, 32>}, {transform_indices = @transform_5, window_bounds = array<i64: 1, 32, 64>}, {transform_indices = @transform_6, window_bounds = array<i64: 1, 1, 64>}, {transform_indices = @transform_7, window_bounds = array<i64: 1, 64, 32>}, {transform_indices = @transform_8, window_bounds = array<i64: 1, 6, 32>}, {transform_indices = @transform_9, window_bounds = array<i64: 1, 8, 32>}]} {
    %c0_i32 = arith.constant 0 : i32
    %0 = arith.cmpi eq, %arg1, %c0_i32 : i32
    %1 = arith.extui %0 : i1 to i32
    %c0_i32_0 = arith.constant 0 : i32
    %2 = arith.cmpi ne, %1, %c0_i32_0 : i32
    scf.if %2 {
      %c0_61 = arith.constant 0 : index
      %c0_62 = arith.constant 0 : index
      %c0_63 = arith.constant 0 : index
      %139 = vector.load %arg2[%c0_61, %c0_62, %c0_63] : memref<1x8x32xf32, #tpu.memory_space<vmem>>, vector<1x8x32xf32>
      %140 = vector.shape_cast %139 : vector<1x8x32xf32> to vector<8x32xf32>
      %c0_64 = arith.constant 0 : index
      %c0_65 = arith.constant 0 : index
      %c0_66 = arith.constant 0 : index
      %141 = vector.load %arg11[%c0_64, %c0_65, %c0_66] : memref<1x8x32xf32, #tpu.memory_space<vmem>>, vector<1x8x32xf32>
      %142 = vector.shape_cast %141 : vector<1x8x32xf32> to vector<8x32xf32>
      %143 = vector.shape_cast %140 : vector<8x32xf32> to vector<1x8x32xf32>
      tpu.vector_store %arg11[%c0_64, %c0_65, %c0_66], %143 {strides = array<i32>} : memref<1x8x32xf32, #tpu.memory_space<vmem>>, vector<1x8x32xf32>,
    } else {
    }
    %c0 = arith.constant 0 : index
    %c0_1 = arith.constant 0 : index
    %c0_2 = arith.constant 0 : index
    %3 = vector.load %arg11[%c0, %c0_1, %c0_2] : memref<1x8x32xf32, #tpu.memory_space<vmem>>, vector<1x8x32xf32>
    %4 = vector.shape_cast %3 : vector<1x8x32xf32> to vector<8x32xf32>
    %5 = arith.truncf %4 : vector<8x32xf32> to vector<8x32xbf16>
    %c0_3 = arith.constant 0 : index
    %c0_4 = arith.constant 0 : index
    %c0_5 = arith.constant 0 : index
    %6 = vector.load %arg4[%c0_3, %c0_4, %c0_5] : memref<1x32x96xbf16, #tpu.memory_space<vmem>>, vector<1x32x96xbf16>
    %7 = vector.shape_cast %6 : vector<1x32x96xbf16> to vector<32x96xbf16>
    %cst = arith.constant dense<0.000000e+00> : vector<8x96xf32>
    %8 = tpu.matmul %5, %7, %cst {dimension_numbers = #tpu.dot_dimension_numbers<[1], [0], [0], [1], [0, 0, 1, 1], [], []>} : vector<8x32xbf16>, vector<32x96xbf16>, vector<8x96xf32> -> vector<8x96xf32>
    %c0_6 = arith.constant 0 : index
    %c0_7 = arith.constant 0 : index
    %c0_8 = arith.constant 0 : index
    %9 = vector.load %arg5[%c0_6, %c0_7, %c0_8] : memref<1x1x96xf32, #tpu.memory_space<vmem>>, vector<1x1x96xf32>
    %10 = vector.shape_cast %9 : vector<1x1x96xf32> to vector<1x96xf32>
    %11 = vector.broadcast %10 : vector<1x96xf32> to vector<8x96xf32>
    %12 = arith.addf %8, %11 : vector<8x96xf32>
    %13 = vector.extract_strided_slice %12 {offsets = [0, 0], sizes = [8, 32], strides = [1, 1]} : vector<8x96xf32> to vector<8x32xf32>
    %14 = vector.shape_cast %13 : vector<8x32xf32> to vector<8x4x8xf32>
    %15 = vector.extract_strided_slice %12 {offsets = [0, 32], sizes = [8, 32], strides = [1, 1]} : vector<8x96xf32> to vector<8x32xf32>
    %16 = vector.shape_cast %15 : vector<8x32xf32> to vector<8x4x8xf32>
    %17 = vector.extract_strided_slice %12 {offsets = [0, 64], sizes = [8, 32], strides = [1, 1]} : vector<8x96xf32> to vector<8x32xf32>
    %18 = vector.shape_cast %17 : vector<8x32xf32> to vector<8x4x8xf32>
    %19 = arith.truncf %14 : vector<8x4x8xf32> to vector<8x4x8xbf16>
    %20 = arith.truncf %16 : vector<8x4x8xf32> to vector<8x4x8xbf16>
    "tpu.trace_start"() <{level = 10 : i32, message = "qhd,khd->hqk"}> : () -> ()
    %cst_9 = arith.constant dense<0.000000e+00> : vector<4x8x8xf32>
    %21 = tpu.matmul %19, %20, %cst_9 {dimension_numbers = #tpu.dot_dimension_numbers<[2], [2], [0], [0], [0, 1, 0, 0, 1, 0], [1], [1]>} : vector<8x4x8xbf16>, vector<8x4x8xbf16>, vector<4x8x8xf32> -> vector<4x8x8xf32>
    "tpu.trace_stop"() : () -> ()
    %cst_10 = arith.constant 0.353553385 : f32
    %22 = vector.broadcast %cst_10 : f32 to vector<4x8x8xf32>
    %23 = arith.mulf %21, %22 : vector<4x8x8xf32>
    %c0_11 = arith.constant 0 : index
    %c0_12 = arith.constant 0 : index
    %c0_13 = arith.constant 0 : index
    %24 = vector.load %arg3[%c0_11, %c0_12, %c0_13] : memref<1x1x8xf32, #tpu.memory_space<vmem>>, vector<1x1x8xf32>
    %25 = vector.shape_cast %24 : vector<1x1x8xf32> to vector<1x8xf32>
    %26 = vector.shape_cast %25 : vector<1x8xf32> to vector<1x1x8xf32>
    %27 = vector.broadcast %26 : vector<1x1x8xf32> to vector<4x8x8xf32>
    %28 = arith.addf %23, %27 : vector<4x8x8xf32>
    %cst_14 = arith.constant dense<0xFF800000> : vector<4x8xf32>
    %29 = vector.multi_reduction <maximumf>, %28, %cst_14 [2] : vector<4x8x8xf32> to vector<4x8xf32>
    %30 = vector.shape_cast %29 : vector<4x8xf32> to vector<4x8x1xf32>
    %31 = vector.broadcast %30 : vector<4x8x1xf32> to vector<4x8x8xf32>
    %32 = arith.subf %28, %31 : vector<4x8x8xf32>
    %33 = math.exp %32 : vector<4x8x8xf32>
    %cst_15 = arith.constant dense<0.000000e+00> : vector<4x8xf32>
    %34 = vector.multi_reduction <add>, %33, %cst_15 [2] : vector<4x8x8xf32> to vector<4x8xf32>
    %35 = vector.shape_cast %34 : vector<4x8xf32> to vector<4x8x1xf32>
    %36 = tpu.reciprocal %35 {approx = true} : vector<4x8x1xf32> -> vector<4x8x1xf32>
    %37 = vector.broadcast %36 : vector<4x8x1xf32> to vector<4x8x8xf32>
    %38 = arith.mulf %33, %37 : vector<4x8x8xf32>
    %39 = arith.truncf %38 : vector<4x8x8xf32> to vector<4x8x8xbf16>
    %40 = arith.truncf %18 : vector<8x4x8xf32> to vector<8x4x8xbf16>
    "tpu.trace_start"() <{level = 10 : i32, message = "hqk,khd->qhd"}> : () -> ()
    %cst_16 = arith.constant dense<0.000000e+00> : vector<4x8x8xf32>
    %41 = tpu.matmul %40, %39, %cst_16 {dimension_numbers = #tpu.dot_dimension_numbers<[0], [2], [2], [1], [0, 1, 0, 2, 1, 1], [1], [0]>} : vector<8x4x8xbf16>, vector<4x8x8xbf16>, vector<4x8x8xf32> -> vector<4x8x8xf32>
    %42 = tpu.transpose %41, [2, 0, 1] : vector<4x8x8xf32> -> vector<8x4x8xf32>
    "tpu.trace_stop"() : () -> ()
    %43 = vector.shape_cast %42 : vector<8x4x8xf32> to vector<8x32xf32>
    %44 = arith.truncf %43 : vector<8x32xf32> to vector<8x32xbf16>
    %c0_17 = arith.constant 0 : index
    %c0_18 = arith.constant 0 : index
    %c0_19 = arith.constant 0 : index
    %45 = vector.load %arg6[%c0_17, %c0_18, %c0_19] : memref<1x32x32xbf16, #tpu.memory_space<vmem>>, vector<1x32x32xbf16>
    %46 = vector.shape_cast %45 : vector<1x32x32xbf16> to vector<32x32xbf16>
    %cst_20 = arith.constant dense<0.000000e+00> : vector<8x32xf32>
    %47 = tpu.matmul %44, %46, %cst_20 {dimension_numbers = #tpu.dot_dimension_numbers<[1], [0], [0], [1], [0, 0, 1, 1], [], []>} : vector<8x32xbf16>, vector<32x32xbf16>, vector<8x32xf32> -> vector<8x32xf32>
    %c0_21 = arith.constant 0 : index
    %c0_22 = arith.constant 0 : index
    %c0_23 = arith.constant 0 : index
    %48 = vector.load %arg10[%c0_21, %c0_22, %c0_23] : memref<1x6x32xf32, #tpu.memory_space<vmem>>, vector<1x1x32xf32>
    %49 = vector.shape_cast %48 : vector<1x1x32xf32> to vector<32xf32>
    %50 = vector.shape_cast %49 : vector<32xf32> to vector<1x32xf32>
    %51 = vector.broadcast %50 : vector<1x32xf32> to vector<8x32xf32>
    %52 = arith.addf %47, %51 : vector<8x32xf32>
    %53 = arith.addf %4, %52 : vector<8x32xf32>
    %c0_24 = arith.constant 0 : index
    %c1 = arith.constant 1 : index
    %c0_25 = arith.constant 0 : index
    %54 = vector.load %arg10[%c0_24, %c1, %c0_25] : memref<1x6x32xf32, #tpu.memory_space<vmem>>, vector<1x1x32xf32>
    %55 = vector.shape_cast %54 : vector<1x1x32xf32> to vector<32xf32>
    %c0_26 = arith.constant 0 : index
    %c2 = arith.constant 2 : index
    %c0_27 = arith.constant 0 : index
    %56 = vector.load %arg10[%c0_26, %c2, %c0_27] : memref<1x6x32xf32, #tpu.memory_space<vmem>>, vector<1x1x32xf32>
    %57 = vector.shape_cast %56 : vector<1x1x32xf32> to vector<32xf32>
    %cst_28 = arith.constant dense<0.000000e+00> : vector<8xf32>
    %58 = vector.multi_reduction <add>, %53, %cst_28 [1] : vector<8x32xf32> to vector<8xf32>
    %59 = vector.shape_cast %58 : vector<8xf32> to vector<8x1xf32>
    %cst_29 = arith.constant 3.200000e+01 : f32
    %60 = vector.broadcast %cst_29 : f32 to vector<8x1xf32>
    %61 = arith.divf %59, %60 : vector<8x1xf32>
    %62 = vector.broadcast %61 : vector<8x1xf32> to vector<8x32xf32>
    %63 = arith.subf %53, %62 : vector<8x32xf32>
    %64 = arith.mulf %63, %63 : vector<8x32xf32>
    %cst_30 = arith.constant dense<0.000000e+00> : vector<8xf32>
    %65 = vector.multi_reduction <add>, %64, %cst_30 [1] : vector<8x32xf32> to vector<8xf32>
    %66 = vector.shape_cast %65 : vector<8xf32> to vector<8x1xf32>
    %cst_31 = arith.constant 3.200000e+01 : f32
    %67 = vector.broadcast %cst_31 : f32 to vector<8x1xf32>
    %68 = arith.divf %66, %67 : vector<8x1xf32>
    %69 = vector.broadcast %61 : vector<8x1xf32> to vector<8x32xf32>
    %70 = arith.subf %53, %69 : vector<8x32xf32>
    %cst_32 = arith.constant 9.99999974E-6 : f32
    %71 = vector.broadcast %cst_32 : f32 to vector<8x1xf32>
    %72 = arith.addf %68, %71 : vector<8x1xf32>
    %73 = math.rsqrt %72 : vector<8x1xf32>
    %74 = vector.broadcast %73 : vector<8x1xf32> to vector<8x32xf32>
    %75 = arith.mulf %70, %74 : vector<8x32xf32>
    %76 = vector.shape_cast %55 : vector<32xf32> to vector<1x32xf32>
    %77 = vector.broadcast %76 : vector<1x32xf32> to vector<8x32xf32>
    %78 = arith.mulf %75, %77 : vector<8x32xf32>
    %79 = vector.shape_cast %57 : vector<32xf32> to vector<1x32xf32>
    %80 = vector.broadcast %79 : vector<1x32xf32> to vector<8x32xf32>
    %81 = arith.addf %78, %80 : vector<8x32xf32>
    %82 = arith.truncf %81 : vector<8x32xf32> to vector<8x32xbf16>
    %c0_33 = arith.constant 0 : index
    %c0_34 = arith.constant 0 : index
    %c0_35 = arith.constant 0 : index
    %83 = vector.load %arg7[%c0_33, %c0_34, %c0_35] : memref<1x32x64xbf16, #tpu.memory_space<vmem>>, vector<1x32x64xbf16>
    %84 = vector.shape_cast %83 : vector<1x32x64xbf16> to vector<32x64xbf16>
    %cst_36 = arith.constant dense<0.000000e+00> : vector<8x64xf32>
    %85 = tpu.matmul %82, %84, %cst_36 {dimension_numbers = #tpu.dot_dimension_numbers<[1], [0], [0], [1], [0, 0, 1, 1], [], []>} : vector<8x32xbf16>, vector<32x64xbf16>, vector<8x64xf32> -> vector<8x64xf32>
    %c0_37 = arith.constant 0 : index
    %c0_38 = arith.constant 0 : index
    %c0_39 = arith.constant 0 : index
    %86 = vector.load %arg8[%c0_37, %c0_38, %c0_39] : memref<1x1x64xf32, #tpu.memory_space<vmem>>, vector<1x1x64xf32>
    %87 = vector.shape_cast %86 : vector<1x1x64xf32> to vector<1x64xf32>
    %88 = vector.broadcast %87 : vector<1x64xf32> to vector<8x64xf32>
    %89 = arith.addf %85, %88 : vector<8x64xf32>
    %cst_40 = arith.constant 5.000000e-01 : f32
    %90 = vector.broadcast %cst_40 : f32 to vector<8x64xf32>
    %91 = arith.mulf %90, %89 : vector<8x64xf32>
    %cst_41 = arith.constant 0.707106769 : f32
    %92 = vector.broadcast %cst_41 : f32 to vector<8x64xf32>
    %93 = arith.mulf %89, %92 : vector<8x64xf32>
    %94 = math.erf %93 : vector<8x64xf32>
    %cst_42 = arith.constant 1.000000e+00 : f32
    %95 = vector.broadcast %cst_42 : f32 to vector<8x64xf32>
    %96 = arith.addf %95, %94 : vector<8x64xf32>
    %97 = arith.mulf %91, %96 : vector<8x64xf32>
    %98 = arith.truncf %97 : vector<8x64xf32> to vector<8x64xbf16>
    %c0_43 = arith.constant 0 : index
    %c0_44 = arith.constant 0 : index
    %c0_45 = arith.constant 0 : index
    %99 = vector.load %arg9[%c0_43, %c0_44, %c0_45] : memref<1x64x32xbf16, #tpu.memory_space<vmem>>, vector<1x64x32xbf16>
    %100 = vector.shape_cast %99 : vector<1x64x32xbf16> to vector<64x32xbf16>
    %cst_46 = arith.constant dense<0.000000e+00> : vector<8x32xf32>
    %101 = tpu.matmul %98, %100, %cst_46 {dimension_numbers = #tpu.dot_dimension_numbers<[1], [0], [0], [1], [0, 0, 1, 1], [], []>} : vector<8x64xbf16>, vector<64x32xbf16>, vector<8x32xf32> -> vector<8x32xf32>
    %c0_47 = arith.constant 0 : index
    %c3 = arith.constant 3 : index
    %c0_48 = arith.constant 0 : index
    %102 = vector.load %arg10[%c0_47, %c3, %c0_48] : memref<1x6x32xf32, #tpu.memory_space<vmem>>, vector<1x1x32xf32>
    %103 = vector.shape_cast %102 : vector<1x1x32xf32> to vector<32xf32>
    %104 = vector.shape_cast %103 : vector<32xf32> to vector<1x32xf32>
    %105 = vector.broadcast %104 : vector<1x32xf32> to vector<8x32xf32>
    %106 = arith.addf %101, %105 : vector<8x32xf32>
    %107 = arith.addf %81, %106 : vector<8x32xf32>
    %c0_49 = arith.constant 0 : index
    %c4 = arith.constant 4 : index
    %c0_50 = arith.constant 0 : index
    %108 = vector.load %arg10[%c0_49, %c4, %c0_50] : memref<1x6x32xf32, #tpu.memory_space<vmem>>, vector<1x1x32xf32>
    %109 = vector.shape_cast %108 : vector<1x1x32xf32> to vector<32xf32>
    %c0_51 = arith.constant 0 : index
    %c5 = arith.constant 5 : index
    %c0_52 = arith.constant 0 : index
    %110 = vector.load %arg10[%c0_51, %c5, %c0_52] : memref<1x6x32xf32, #tpu.memory_space<vmem>>, vector<1x1x32xf32>
    %111 = vector.shape_cast %110 : vector<1x1x32xf32> to vector<32xf32>
    %cst_53 = arith.constant dense<0.000000e+00> : vector<8xf32>
    %112 = vector.multi_reduction <add>, %107, %cst_53 [1] : vector<8x32xf32> to vector<8xf32>
    %113 = vector.shape_cast %112 : vector<8xf32> to vector<8x1xf32>
    %cst_54 = arith.constant 3.200000e+01 : f32
    %114 = vector.broadcast %cst_54 : f32 to vector<8x1xf32>
    %115 = arith.divf %113, %114 : vector<8x1xf32>
    %116 = vector.broadcast %115 : vector<8x1xf32> to vector<8x32xf32>
    %117 = arith.subf %107, %116 : vector<8x32xf32>
    %118 = arith.mulf %117, %117 : vector<8x32xf32>
    %cst_55 = arith.constant dense<0.000000e+00> : vector<8xf32>
    %119 = vector.multi_reduction <add>, %118, %cst_55 [1] : vector<8x32xf32> to vector<8xf32>
    %120 = vector.shape_cast %119 : vector<8xf32> to vector<8x1xf32>
    %cst_56 = arith.constant 3.200000e+01 : f32
    %121 = vector.broadcast %cst_56 : f32 to vector<8x1xf32>
    %122 = arith.divf %120, %121 : vector<8x1xf32>
    %123 = vector.broadcast %115 : vector<8x1xf32> to vector<8x32xf32>
    %124 = arith.subf %107, %123 : vector<8x32xf32>
    %cst_57 = arith.constant 9.99999974E-6 : f32
    %125 = vector.broadcast %cst_57 : f32 to vector<8x1xf32>
    %126 = arith.addf %122, %125 : vector<8x1xf32>
    %127 = math.rsqrt %126 : vector<8x1xf32>
    %128 = vector.broadcast %127 : vector<8x1xf32> to vector<8x32xf32>
    %129 = arith.mulf %124, %128 : vector<8x32xf32>
    %130 = vector.shape_cast %109 : vector<32xf32> to vector<1x32xf32>
    %131 = vector.broadcast %130 : vector<1x32xf32> to vector<8x32xf32>
    %132 = arith.mulf %129, %131 : vector<8x32xf32>
    %133 = vector.shape_cast %111 : vector<32xf32> to vector<1x32xf32>
    %134 = vector.broadcast %133 : vector<1x32xf32> to vector<8x32xf32>
    %135 = arith.addf %132, %134 : vector<8x32xf32>
    %c0_58 = arith.constant 0 : index
    %c0_59 = arith.constant 0 : index
    %c0_60 = arith.constant 0 : index
    %136 = vector.load %arg11[%c0_58, %c0_59, %c0_60] : memref<1x8x32xf32, #tpu.memory_space<vmem>>, vector<1x8x32xf32>
    %137 = vector.shape_cast %136 : vector<1x8x32xf32> to vector<8x32xf32>
    %138 = vector.shape_cast %135 : vector<8x32xf32> to vector<1x8x32xf32>
    tpu.vector_store %arg11[%c0_58, %c0_59, %c0_60], %138 {strides = array<i32>} : memref<1x8x32xf32, #tpu.memory_space<vmem>>, vector<1x8x32xf32>,
    return
  }
  func.func @transform_0(%arg0: i32, %arg1: i32) -> (i32, i32, i32) {
    %c0_i32 = arith.constant 0 : i32
    %c0_i32_0 = arith.constant 0 : i32
    %c0_i32_1 = arith.constant 0 : i32
    return %arg0, %c0_i32, %c0_i32_0 : i32, i32, i32
  }
  func.func @transform_1(%arg0: i32, %arg1: i32) -> (i32, i32, i32) {
    %c0_i32 = arith.constant 0 : i32
    %c0_i32_0 = arith.constant 0 : i32
    %c0_i32_1 = arith.constant 0 : i32
    return %arg0, %c0_i32, %c0_i32_0 : i32, i32, i32
  }
  func.func @transform_2(%arg0: i32, %arg1: i32) -> (i32, i32, i32) {
    %c0_i32 = arith.constant 0 : i32
    %c0_i32_0 = arith.constant 0 : i32
    %c0_i32_1 = arith.constant 0 : i32
    return %arg1, %c0_i32, %c0_i32_0 : i32, i32, i32
  }
  func.func @transform_3(%arg0: i32, %arg1: i32) -> (i32, i32, i32) {
    %c0_i32 = arith.constant 0 : i32
    %c0_i32_0 = arith.constant 0 : i32
    %c0_i32_1 = arith.constant 0 : i32
    return %arg1, %c0_i32, %c0_i32_0 : i32, i32, i32
  }
  func.func @transform_4(%arg0: i32, %arg1: i32) -> (i32, i32, i32) {
    %c0_i32 = arith.constant 0 : i32
    %c0_i32_0 = arith.constant 0 : i32
    %c0_i32_1 = arith.constant 0 : i32
    return %arg1, %c0_i32, %c0_i32_0 : i32, i32, i32
  }
  func.func @transform_5(%arg0: i32, %arg1: i32) -> (i32, i32, i32) {
    %c0_i32 = arith.constant 0 : i32
    %c0_i32_0 = arith.constant 0 : i32
    %c0_i32_1 = arith.constant 0 : i32
    return %arg1, %c0_i32, %c0_i32_0 : i32, i32, i32
  }
  func.func @transform_6(%arg0: i32, %arg1: i32) -> (i32, i32, i32) {
    %c0_i32 = arith.constant 0 : i32
    %c0_i32_0 = arith.constant 0 : i32
    %c0_i32_1 = arith.constant 0 : i32
    return %arg1, %c0_i32, %c0_i32_0 : i32, i32, i32
  }
  func.func @transform_7(%arg0: i32, %arg1: i32) -> (i32, i32, i32) {
    %c0_i32 = arith.constant 0 : i32
    %c0_i32_0 = arith.constant 0 : i32
    %c0_i32_1 = arith.constant 0 : i32
    return %arg1, %c0_i32, %c0_i32_0 : i32, i32, i32
  }
  func.func @transform_8(%arg0: i32, %arg1: i32) -> (i32, i32, i32) {
    %c0_i32 = arith.constant 0 : i32
    %c0_i32_0 = arith.constant 0 : i32
    %c0_i32_1 = arith.constant 0 : i32
    return %arg1, %c0_i32, %c0_i32_0 : i32, i32, i32
  }
  func.func @transform_9(%arg0: i32, %arg1: i32) -> (i32, i32, i32) {
    %c0_i32 = arith.constant 0 : i32
    %c0_i32_0 = arith.constant 0 : i32
    %c0_i32_1 = arith.constant 0 : i32
    return %arg0, %c0_i32, %c0_i32_0 : i32, i32, i32
  }
}

</mosaic_0001>

<bundles_post_ra>
// kernel: tpu_custom_call.1
= control target key start
LH: loop header
LB: loop body
LE: loop exit
PB: predicated region body
PF: predicated region fallthrough
CT: control target
= control target key end

     0   :  { %s3865_s0 = inlined_call_operand.hbm [shape: f32[2,8,32], index: 0, kind: input, shape index: {}]   ;;  %s3866_s1 = inlined_call_operand.vmem [shape: f32[2,1,8], index: 1, kind: input, shape index: {}]   ;;  %s3867_s2 = inlined_call_operand.vmem [shape: bf16[2,32,96], index: 2, kind: input, shape index: {}]   ;;  %s3868_s3 = inlined_call_operand.vmem [shape: f32[2,1,96], index: 3, kind: input, shape index: {}]   ;;  %s3869_s4 = inlined_call_operand.vmem [shape: bf16[2,32,32], index: 4, kind: input, shape index: {}]   ;;  %s3870_s5 = inlined_call_operand.vmem [shape: bf16[2,32,64], index: 5, kind: input, shape index: {}]   ;;  %s3871_s6 = inlined_call_operand.vmem [shape: f32[2,1,64], index: 6, kind: input, shape index: {}]   ;;  %s3872_s7 = inlined_call_operand.vmem [shape: bf16[2,64,32], index: 7, kind: input, shape index: {}]   ;;  %s3873_s8 = inlined_call_operand.vmem [shape: f32[2,6,32], index: 8, kind: input, shape index: {}]   ;;  %s3874_s9 = inlined_call_operand.hbm [shape: f32[2,8,32], index: 9, kind: output, shape index: {}]  }
   0x1   :  { %3888 = sst [smem:[#allocation20_spill]] %s3865_s0 }
   0x2   :  { %3889 = sst [smem:[#allocation21_spill]] %s3867_s2 }
   0x3   :  { %3890 = sst [smem:[#allocation22_spill]] %s3874_s9 }
   0x4   :  { %14 = vsyncpa [#allocation3], 0 }
   0x5   :  { %16 = vsyncpa [#allocation3 + $0x1], 0 }
   0x6   :  { %17 = vsyncpa [#allocation4], 0 }
   0x7   :  { %19 = vsyncpa [#allocation4 + $0x1], 0  ;;  %s3398_s30 = smov 0   ;;  %s3400_s10 = smov 0  }
   0x8   :  { %s3402_s11 = smov 0   ;;  %s3404_s12 = smov 0  }
   0x9   :  { %s3406_s13 = smov 0   ;;  %s3408_s14 = smov 0  }
   0xa   :  { %s3410_s15 = smov 0   ;;  %s3412_s16 = smov 0  }
   0xb LB: > { %3891 = sst [smem:[#allocation8_spill]] %s3303_s30  ;;  %s2905_s17 = sadd.s32 4294967295, %s3331_s16   ;;  %s3331_s16 = sphi %s3412_s16, %s25_s16   ;;  %s3327_s15 = sphi %s3410_s15, %s3926_s15   ;;  %s3323_s14 = sphi %s3408_s14, %s3925_s14   ;;  %s3319_s13 = sphi %s3406_s13, %s3924_s13   ;;  %s3315_s12 = sphi %s3404_s12, %s3923_s12   ;;  %s3311_s11 = sphi %s3402_s11, %s3922_s11   ;;  %s3307_s10 = sphi %s3400_s10, %s3921_s10   ;;  %s3303_s30 = sphi %s3398_s30, %s3920_s30  }
   0xc   : > { %3892 = sst [smem:[#allocation9_spill]] %s3307_s10  ;;  %s2906_s18 = sadd.s32 4294967294, %s3331_s16  }
   0xd   : > { %3893 = sst [smem:[#allocation10_spill]] %s3311_s11  ;;  %s34_s19 = sadd.s32 1, %s3323_s14 }
   0xe   : > { %3894 = sst [smem:[#allocation11_spill]] %s3323_s14  ;;  %s37_s20 = sadd.s32 1, %s3327_s15 }
   0xf   : > { %3895 = sst [smem:[#allocation12_spill]] %s3327_s15  ;;  %p35_p0 = scmp.ge.s32.totalorder %s34_s19, 2 }
  0x10   : > { %3896 = sst [smem:[#allocation13_spill]] %s3331_s16  ;;  %s44_s21 = sadd.s32 1, %s3311_s11 }
  0x11   : > { %p51_p1 = scmp.ne.s32.totalorder %s3311_s11, %s3307_s10  ;;  %p52_p2 = scmp.eq.s32.totalorder %s3331_s16, 0 }
  0x12   : > { %s3928_s19 = smov (%p35_p0, %s34_s19), 0  ;;  %s3930_s20 = smov (!%p35_p0, %s37_s20), %s3327_s15 }
  0x13   : > { %3897 = sst [smem:[#allocation14_spill]] %s3928_s19  ;;  %p3449_p3 = por %p52_p2, %p51_p1 }
  0x14   : > { %p57_p4 = scmp.ne.s32.totalorder %s3307_s10, %s3303_s30  ;;  %p39_p5 = scmp.ge.s32.totalorder %s3930_s20, 2 }
  0x15   : > { %p58_p6 = scmp.eq.s32.totalorder %s2905_s17, 0  ;;  %p289_p7 = scmp.eq.s32.totalorder %s2905_s17, 3 }
  0x16   : > { %p295_p8 = scmp.eq.s32.totalorder %s2906_s18, 3  ;;  %s3932_s20 = smov (%p39_p5, %s3930_s20), 0 }
  0x17   : > { %3899 = sst [smem:[#allocation15_spill]] %s3932_s20  ;;  %p3457_p9 = por %p58_p6, %p57_p4 }
  0x18   : > { %p3461_p10 = por %p289_p7, %p51_p1  ;;  %s41_s25 = ssub.s32 %s3327_s15, %s3932_s20 }
  0x19   : > { %p3467_p11 = por %p295_p8, %p57_p4  ;;  %p42_p12 = scmp.eq.s32.totalorder %s41_s25, 0 }
  0x1a   : > { %s3901_s24 = scalar_select %p3461_p10, 1, 0 }
  0x1b   : > { %s3903_s26 = scalar_select %p3467_p11, 1, 0 }
  0x1c   : > { %3902 = sst [smem:[#allocation16_spill]] %s3901_s24  ;;  %p3095_p13 = scmp.lt.s32.totalorder %s3331_s16, 4 }
  0x1d   : > { %3904 = sst [smem:[#allocation17_spill]] %s3903_s26  ;;  %s315_s27 = sand.u32 1, %s3311_s11  }
  0x1e   : > { %s3474_s28 = scalar_select %p42_p12, %s3311_s11, %s44_s21  }
  0x1f   : > { %s2909_s29 = sshll.u32 %s315_s27, 3  ;;  %s2910_s17 = sshll.u32 %s3327_s15, 7 }
  0x20   : > { %3905 = sst [smem:[#allocation18_spill]] %s3474_s28  ;;  %s319_s30 = scalar_lea.vmem [#allocation2], %s2909_s29 }
  0x21   : > { %s3906_s0 = sld [smem:[#allocation20_spill]]  ;;  %s326_s9 = sshll.u32 %s319_s30, 4  ;;  %s327_s9 = int_to_ptr.vmem [resolvable:$true] %s326_s9 }
  0x22   : > { %p3482_p0 = pnand %p3095_p13, %p3449_p3  ;;  %p2911_p1 = scmp.ge.s32.totalorder %s3331_s16, 1 }
  0x23   : > { %p388_p2 = scmp.lt.s32.totalorder %s3331_s16, 5  ;;  %s316_s25 = scalar_lea.sflag [#allocation3], %s315_s27 }
  0x24   : > { %p3209_p4 = pneg %p3482_p0  ;;  %s3220_s21 = scalar_lea.vmem %s327_s9, 128 }
  0x25   : > { %p3221_p5 = scmp.ne.s32.totalorder %s327_s9, %s3220_s21  ;;  %s3333_s19 = smov [#allocation2]  }
  0x27   : > { %s324_s14 = scalar_lea.hbm %s3906_s0, %s2910_s17  ;;  %p3223_p6 = pnand %p3221_p5, %p3209_p4 }
  0x28   : > { %s3225_s17 = sshll.u32 %s3333_s19, 4  ;;  %s3226_s17 = int_to_ptr.vmem [resolvable:$false] %s3225_s17 }
  0x29   : > { %p3224_p7 = pneg %p3223_p6  ;;  %s3227_s30 = scalar_lea.vmem %s3226_s17, 256 }
  0x2a   : > { %p3228_p8 = scmp.lt.s32.totalorder %s327_s9, %s3226_s17  ;;  %p3229_p12 = scmp.lt.s32.totalorder %s3227_s30, %s3220_s21 }
  0x2c   : > { %p3230_p3 = por %p3229_p12, %p3228_p8 }
  0x2e   : > { %p3231_p13 = pnand %p3230_p3, %p3224_p7 }
  0x30   : > { %3234 = shalt.err (!%p3231_p13)
}
  0x31   : > { %3090 = dma.hbm_to_vmem [thread:$0]  (!%p3482_p0), %s324_s14, 128, %s327_s9, %s316_s25  }
  0x32   : > { %p389_p11 = pnand %p2911_p1, %p388_p2 }
  0x34   : > { %392 = sbr.rel (%p389_p11) target bundleno = 3152 (0xc50), region = 56 }
  0x39   : > { %s3497_s22 = sand.u32 1, %s3307_s10  }
  0x3a   : > { %3908 = sst [smem:[#allocation19_spill]] %s3497_s22  ;;  %s2912_s27 = sshll.u32 %s3497_s22, 3 }
  0x3b   : > { %s395_s29 = scalar_lea.sflag [#allocation3], %s3497_s22  ;;  %s398_s18 = scalar_lea.vmem [#allocation2], %s2912_s27 }
  0x3c   : > { %3294 = dma.done.wait (%p3457_p9), %s395_s29, 128  }
  0x3d   : > { %3296 = vsyncadd (%p3457_p9), %s395_s29, 4294967168  ;;  %p466_p0 = scmp.lt.s32.totalorder %s3319_s13, 1  ;;  %p469_p11 = scmp.lt.s32.totalorder %s3315_s12, 1 }
  0x3e   : > { %s3909_s2 = sld [smem:[#allocation21_spill]]  ;;  %p2923_p9 = scmp.ne.s32.totalorder %s3315_s12, 0 }
  0x3f   : > { %s3508_s9 = scalar_select %p466_p0, %s3319_s13, 1 }
  0x40   : > { %s3511_s14 = scalar_select %p469_p11, %s3315_s12, 1 }
  0x42   : > { %s2965_s21 = sshll.u32 %s3511_s14, 4  ;;  %s489_s24 = scalar_lea.vmem %s3871_s6, %s3511_s14 }
  0x43   : > { %s3528_s10 = scalar_lea.vmem %s3869_s4, %s2965_s21  ;;  %s3533_s26 = scalar_lea.vmem %s3870_s5, %s2965_s21 }
  0x44   : > { %s473_s15 = scalar_lea.vmem %s3909_s2, %s2965_s21  ;;  %s2968_s19 = sshll.u32 %s3511_s14, 5 }
  0x45   : > { %s2922_s17 = sshll.u32 %s3511_s14, 3  ;;  %s3544_s0 = scalar_lea.vmem %s3872_s7, %s2968_s19 }
  0x46   : > { %s3549_s28 = scalar_lea.vmem %s3873_s8, %s2922_s17  ;;  %s3551_s2 = scalar_lea.vmem [#allocation5], %s2912_s27 }
  0x47   : > { %503 = sbr.rel (%p2923_p9) target bundleno = 78 (0x4e), region = 64 }
  0x4c   : > { %v504_v0 = vld [vmem:[%s398_s18] sm:$0xff]  ;;  %vm505_vm0 = vcmask 261120  }
  0x4d   : > { %506 = vst.msk [vmem:[%s3551_s2] sm:$0xff] %vm505_vm0, %v504_v0 }
  0x4e PF: > { %v3174_v1 = vld [vmem:[%s473_s15 + $0x8] sm:$0xff]   ;;  %v3334_v2 = vmov 0.0   ;;  %v3175_v3 = vld [vmem:[%s473_s15] sm:$0xff]   ;;  %vm3335_vm1 = vmmov 0   ;;  %vm532_vm2 = vcmask 261120   ;;  %s3910_s16 = scalar_lea.vmem %s3868_s3, %s3511_s14  ;;  %s3336_s22 = smov 104   ;;  %v591_v17 = vlaneseq }
  0x4f   : > { %2999 = vmatprep.subr.bf16.mxu0 %v3334_v2  ;;  %3007 = vmatprep.subr.bf16.mxu1 %v3334_v2  ;;  %v2924_v6 = vld [vmem:[%s3910_s16] ss:$0 sm:$0xff]  ;;  %s3337_s27 = smov 120   ;;  %s3338_s18 = smov 96   ;;  %v3340_v15 = vmov 1983009808  }
  0x50   : > { %3000 = vmatpush3.bf16.msra.mxu0 %v3174_v1  ;;  %3003 = vmatprep.mubr.msk.bf16.mxu0 %vm3335_vm1, %v3334_v2  ;;  %s3339_s23 = smov 112   ;;  %v589_v16 = vunpack.c.l.s4 %v3340_v15  ;;  %v592_v19 = vshrl.u32 %v591_v17, 7  ;;  %v3341_v21 = vmov 1934713408   ;;  %s3343_s21 = smov 64   ;;  %vm1314_vm3 = vcmask 1043456  }
  0x51   : > { %3001 = vmatprep.subr.bf16.mxu0 %v3334_v2  ;;  %3009 = vmatprep.mubr.msk.bf16.mxu1 %vm3335_vm1, %v3334_v2  ;;  %v621_v22 = vunpack.c.l.s4 %v3341_v21  ;;  %vm1310_vm4 = vcmask 64512   ;;  %s3911_s25 = scalar_lea.vmem %s3866_s1, %s3508_s9  ;;  %s3345_s9 = smov 8   ;;  %vm2446_vm5 = vcmask 130048   ;;  %vm2448_vm6 = vcmask 195584  }
  0x52   : > { %v590_v18 = vunpack.c.0.s8 %v589_v16  ;;  %s3346_s19 = smov 24   ;;  %vm2652_vm7 = vcmask 523264   ;;  %s2737_s29 = sshll.u32 %s3551_s2, 4  ;;  %s2738_s29 = int_to_ptr.vmem [resolvable:$true] %s2737_s29 }
  0x53   : > { %v622_v25 = vunpack.c.0.s8 %v621_v22  ;;  %s3914_s15 = sld [smem:[#allocation22_spill]] }
  0x54   : > { %v507_v4 = vld [vmem:[%s3551_s2] sm:$0xff]  ;;  %3002 = vmatpush3.bf16.msra.mxu0 %v3175_v3  ;;  %v3587_v24 = vsub.s32 %v590_v18, %v592_v19 }
  0x55   : > { %v508_v5 = vpack.c.bf16 %v507_v4, %v507_v4  ;;  %3031 = vmatprep.subr.bf16.mxu0 %v3334_v2  ;;  %v3593_v36 = vsub.s32 %v622_v25, %v592_v19 }
  0x57   : > { %3004 = vmatmul.mubr.msk.bf16.vlgmr.msra.gmra.mxu0 %vm532_vm2, %v508_v5 }
  0x58   : > { %3033 = vmatprep.mubr.msk.bf16.mxu0 %vm3335_vm1, %v3334_v2 }
 0x117   : > { %v570_v7 = vpop.f32.mrf.mxu0 }
 0x118   : > { %v3572_v8 = vadd.f32 %v2924_v6, %v570_v7 }
 0x119   : > { %v3005_v9 = vpop.f32.mrf.mxu0 }
 0x11a   : > { %583 = vrot.lane.b32.xlu1 %v3572_v8, %s3336_s22  ;;  %577 = vrot.lane.b32.xlu0 %v3572_v8, %s3337_s27  ;;  %s3915_s22 = smov %s3914_s15 }
 0x11b   : > { %v573_v10 = vpop.f32.mrf.mxu0 }
 0x11d   : > { %v3006_v11 = vpop.f32.mrf.mxu0 }
 0x11e   : > { %654 = vrot.lane.b32.xlu1 %v3572_v8, %s3338_s18  ;;  %580 = vrot.lane.b32.xlu0 %v3572_v8, %s3339_s23  ;;  %s3347_s23 = smov [#allocation5]  }
 0x18c   : > { %v3578_v12 = vpop.permute.xlu0 %577  ;;  %v3581_v13 = vpop.permute.xlu1 %583 }
 0x18d   : > { %656 = vrot.lane.b32.xlu0 %v3578_v12, %s3338_s18 }
 0x190   : > { %v3583_v14 = vpop.permute.xlu0 %580  ;;  %v655_v20 = vpop.permute.xlu1 %654 }
 0x191   : > { %660 = vrot.lane.b32.xlu0 %v3581_v13, %s3338_s18  ;;  %658 = vrot.lane.b32.xlu1 %v3583_v14, %s3338_s18  ;;  %s3235_s18 = scalar_lea.vmem %s2738_s29, 128 }
 0x192   : > { %p3236_p1 = scmp.ne.s32.totalorder %s2738_s29, %s3235_s18 }
 0x194   : > { %p3237_p2 = pnand %p3236_p1, %p3461_p10 }
 0x196   : > { %p3238_p4 = pneg %p3237_p2 }
 0x1ff   : > { %v657_v23 = vpop.permute.xlu0 %656 }
 0x203   : > { %v659_v26 = vpop.permute.xlu1 %658  ;;  %v661_v27 = vpop.permute.xlu0 %660 }
 0x204   : > { %v666_v28 = vcombine.low %v655_v20, %v659_v26  ;;  %v667_v29 = vcombine.high %v655_v20, %v659_v26  ;;  %v682_v30 = vcombine.low %v657_v23, %v661_v27  ;;  %v683_v31 = vcombine.high %v657_v23, %v661_v27 }
 0x206   : > { %v674_v32 = vrot.slane %v666_v28, %v3587_v24  ;;  %v681_v33 = vrot.slane %v667_v29, %v3587_v24  ;;  %v690_v34 = vrot.slane %v682_v30, %v3587_v24  ;;  %v697_v35 = vrot.slane %v683_v31, %v3587_v24 }
 0x207   : > { %v3342_v29 = vmov 0  }
 0x208   : > { %v699_v37 = vcombine.high %v674_v32, %v690_v34  ;;  %v698_v38 = vcombine.low %v674_v32, %v690_v34  ;;  %v714_v39 = vcombine.low %v681_v33, %v697_v35  ;;  %v715_v42 = vcombine.high %v681_v33, %v697_v35 }
 0x20a   : > { %v713_v40 = vrot.slane %v699_v37, %v3593_v36  ;;  %v706_v41 = vrot.slane %v698_v38, %v3593_v36  ;;  %v722_v45 = vrot.slane %v714_v39, %v3593_v36  ;;  %v729_v47 = vrot.slane %v715_v42, %v3593_v36 }
 0x20c   : > { %v824_v43 = vpack.c.bf16 %v713_v40, %v713_v40  ;;  %v822_v44 = vpack.c.bf16 %v706_v41, %v706_v41  ;;  %v731_v46 = vcombine.high %v713_v40, %v3334_v2  ;;  %v826_v48 = vpack.c.bf16 %v722_v45, %v722_v45 }
 0x20d   : > { %v732_v50 = vcombine.high %v722_v45, %v3334_v2  ;;  %v730_v51 = vcombine.high %v706_v41, %v3334_v2  ;;  %v733_v54 = vcombine.high %v729_v47, %v3334_v2  ;;  %v828_v56 = vpack.c.bf16 %v729_v47, %v729_v47 }
 0x20e   : > { %924 = vxpose.xlu0.c.b16.start.end [1/1] (short) (narrow) %v824_v43, 16  ;;  %892 = vxpose.xlu1.c.b16.start.end [1/1] (short) (narrow) %v822_v44, 16  ;;  %v825_v49 = vpack.c.bf16 %v731_v46, %v731_v46  ;;  %v586_v45 = vcombine.low %v3572_v8, %v3583_v14  ;;  %v587_v46 = vcombine.high %v3572_v8, %v3583_v14 }
 0x20f   : > { %v827_v52 = vpack.c.bf16 %v732_v50, %v732_v50  ;;  %v823_v53 = vpack.c.bf16 %v730_v51, %v730_v51  ;;  %v829_v55 = vpack.c.bf16 %v733_v54, %v733_v54  ;;  %v602_v47 = vcombine.low %v3578_v12, %v3581_v13 }
 0x210   : > { %v601_v50 = vrot.slane %v587_v46, %v3587_v24 }
 0x211   : > { %v610_v51 = vrot.slane %v602_v47, %v3587_v24 }
 0x212   : > { %956 = vxpose.xlu0.c.b16.start.end [1/1] (short) (narrow) %v826_v48, 16  ;;  %940 = vxpose.xlu1.c.b16.start.end [1/1] (short) (narrow) %v825_v49, 16  ;;  %v603_v48 = vcombine.high %v3578_v12, %v3581_v13  ;;  %v594_v49 = vrot.slane %v586_v45, %v3587_v24 }
 0x216   : > { %972 = vxpose.xlu1.c.b16.start.end [1/1] (short) (narrow) %v827_v52, 16  ;;  %908 = vxpose.xlu0.c.b16.start.end [1/1] (short) (narrow) %v823_v53, 16  ;;  %v617_v52 = vrot.slane %v603_v48, %v3587_v24  ;;  %v618_v53 = vcombine.low %v594_v49, %v610_v51 }
 0x218   : > { %v634_v54 = vcombine.low %v601_v50, %v617_v52 }
 0x21a   : > { %1004 = vxpose.xlu1.c.b16.start.end [1/1] (short) (narrow) %v829_v55, 16  ;;  %988 = vxpose.xlu0.c.b16.start.end [1/1] (short) (narrow) %v828_v56, 16  ;;  %v619_v55 = vcombine.high %v594_v49, %v610_v51  ;;  %v635_v56 = vcombine.high %v601_v50, %v617_v52 }
 0x270   : > { %v932_v57 = vpop.trf.xlu0  ;;  %v900_v58 = vpop.trf.xlu1 }
 0x274   : > { %v964_v59 = vpop.trf.xlu0  ;;  %v948_v60 = vpop.trf.xlu1 }
 0x275   : > { %v1020_v63 = vcombine.low %v900_v58, %v964_v59  ;;  %v642_v58 = vrot.slane %v634_v54, %v3593_v36 }
 0x277   : > { %v1027_v6 = vrot.slane %v1020_v63, %v3587_v24  ;;  %v652_v63 = vcombine.high %v642_v58, %v3334_v2 }
 0x278   : > { %v980_v61 = vpop.trf.xlu1  ;;  %v916_v62 = vpop.trf.xlu0 }
 0x279   : > { %v1054_v0 = vcombine.low %v916_v62, %v980_v61 }
 0x27b   : > { %v1061_v7 = vrot.slane %v1054_v0, %v3587_v24 }
 0x27c   : > { %v1012_v1 = vpop.trf.xlu1  ;;  %v996_v3 = vpop.trf.xlu0 }
 0x27d   : > { %v1062_v4 = vcombine.low %v948_v60, %v1012_v1  ;;  %v1028_v5 = vcombine.low %v932_v57, %v996_v3  ;;  %v649_v60 = vrot.slane %v635_v56, %v3593_v36 }
 0x27f   : > { %v1069_v9 = vrot.slane %v1062_v4, %v3587_v24  ;;  %v1035_v10 = vrot.slane %v1028_v5, %v3587_v24  ;;  %v653_v3 = vcombine.high %v649_v60, %v3334_v2 }
 0x281   : > { %v1070_v11 = vcombine.low %v1061_v7, %v1069_v9  ;;  %v1071_v15 = vcombine.high %v1061_v7, %v1069_v9  ;;  %v1036_v16 = vcombine.low %v1027_v6, %v1035_v10  ;;  %v1037_v17 = vcombine.high %v1027_v6, %v1035_v10 }
 0x283   : > { %v1044_v18 = vrot.slane %v1036_v16, %v3593_v36  ;;  %v1078_v19 = vrot.slane %v1070_v11, %v3593_v36  ;;  %v1051_v20 = vrot.slane %v1037_v17, %v3593_v36  ;;  %v1085_v21 = vrot.slane %v1071_v15, %v3593_v36 }
 0x285   : > { %v1090_v22 = vpack.i.b16 %v1078_v19, %v1044_v18  ;;  %v1092_v23 = vshrl.u32 %v1044_v18, 16  ;;  %v1093_v25 = vshrl.u32 %v1078_v19, 16  ;;  %v1108_v26 = vshrl.u32 %v1051_v20, 16 }
 0x286   : > { %v1109_v28 = vshrl.u32 %v1085_v21, 16  ;;  %v1052_v30 = vcombine.high %v1044_v18, %v3342_v29  ;;  %v1086_v31 = vcombine.high %v1078_v19, %v3342_v29  ;;  %v1106_v32 = vpack.i.b16 %v1085_v21, %v1051_v20 }
 0x287   : > { %1120 = vxpose.xlu0.c.b16.start.end [1/1] (short) (narrow) %v1090_v22, 16  ;;  %v1094_v27 = vpack.i.b16 %v1093_v25, %v1092_v23  ;;  %v1053_v33 = vcombine.high %v1051_v20, %v3342_v29  ;;  %v1087_v38 = vcombine.high %v1085_v21, %v3342_v29 }
 0x288   : > { %v1110_v34 = vpack.i.b16 %v1109_v28, %v1108_v26  ;;  %v1100_v35 = vshrl.u32 %v1052_v30, 16  ;;  %v1101_v37 = vshrl.u32 %v1086_v31, 16  ;;  %v1098_v39 = vpack.i.b16 %v1086_v31, %v1052_v30 }
 0x289   : > { %1136 = vxpose.xlu1.c.b16.start.end [1/1] (short) (narrow) %v1094_v27, 16  ;;  %v1116_v41 = vshrl.u32 %v1053_v33, 16  ;;  %v1117_v42 = vshrl.u32 %v1087_v38, 16  ;;  %v1114_v43 = vpack.i.b16 %v1087_v38, %v1053_v33 }
 0x28a   : > { %v1102_v40 = vpack.i.b16 %v1101_v37, %v1100_v35 }
 0x28b   : > { %1184 = vxpose.xlu0.c.b16.start.end [1/1] (short) (narrow) %v1106_v32, 16  ;;  %v1118_v44 = vpack.i.b16 %v1117_v42, %v1116_v41 }
 0x28d   : > { %1200 = vxpose.xlu1.c.b16.start.end [1/1] (short) (narrow) %v1110_v34, 16 }
 0x28f   : > { %1152 = vxpose.xlu0.c.b16.start.end [1/1] (short) (narrow) %v1098_v39, 16 }
 0x291   : > { %1168 = vxpose.xlu1.c.b16.start.end [1/1] (short) (narrow) %v1102_v40, 16 }
 0x293   : > { %1216 = vxpose.xlu0.c.b16.start.end [1/1] (short) (narrow) %v1114_v43, 16 }
 0x295   : > { %1232 = vxpose.xlu1.c.b16.start.end [1/1] (short) (narrow) %v1118_v44, 16 }
 0x299   : > { %736 = vrot.lane.b32.xlu1 %v3578_v12, %s3343_s21  ;;  %v633_v12 = vrot.slane %v619_v55, %v3593_v36 }
 0x29b   : > { %v651_v1 = vcombine.high %v633_v12, %v3334_v2  ;;  %v2929_v15 = vpack.c.bf16 %v649_v60, %v633_v12 }
 0x29c   : > { %734 = vrot.lane.b32.xlu0 %v3572_v8, %s3343_s21  ;;  %v626_v8 = vrot.slane %v618_v53, %v3593_v36 }
 0x29d   : > { %v2931_v7 = vpack.c.bf16 %v653_v3, %v651_v1  ;;  %v845_v26 = vrot.slane %v2929_v15, %v3587_v24 }
 0x29e   : > { %v650_v62 = vcombine.high %v626_v8, %v3334_v2  ;;  %v2928_v10 = vpack.c.bf16 %v642_v58, %v626_v8 }
 0x29f   : > { %v870_v23 = vrot.slane %v2931_v7, %v3587_v24 }
 0x2a0   : > { %v2930_v5 = vpack.c.bf16 %v652_v63, %v650_v62  ;;  %v837_v25 = vrot.slane %v2928_v10, %v3587_v24  ;;  %v2936_v62 = vld [vmem:[%s3911_s25] ss:$0 sm:$0xff] }
 0x2a2   : > { %v862_v19 = vrot.slane %v2930_v5, %v3587_v24  ;;  %v846_v35 = vcombine.low %v837_v25, %v845_v26 }
 0x2a4   : > { %v871_v33 = vcombine.low %v862_v19, %v870_v23  ;;  %v853_v42 = vrot.slane %v846_v35, %v3593_v36 }
 0x2a6   : > { %v878_v38 = vrot.slane %v871_v33, %v3593_v36  ;;  %v883_v49 = vshrl.u32 %v853_v42, 16  ;;  %v854_v56 = vcombine.high %v853_v42, %v3342_v29 }
 0x2a8   : > { %v882_v44 = vpack.i.b16 %v878_v38, %v853_v42  ;;  %v884_v47 = vshrl.u32 %v878_v38, 16  ;;  %v879_v54 = vcombine.high %v878_v38, %v3342_v29  ;;  %v889_v12 = vshrl.u32 %v854_v56, 16 }
 0x2aa   : > { %v885_v51 = vpack.i.b16 %v884_v47, %v883_v49  ;;  %v888_v8 = vpack.i.b16 %v879_v54, %v854_v56 }
 0x2e9   : > { %v1128_v57 = vpop.trf.xlu0 }
 0x2eb   : > { %v1144_v59 = vpop.trf.xlu1 }
 0x2ed   : > { %v1192_v61 = vpop.trf.xlu0 }
 0x2ee   : > { %v1248_v9 = vcombine.low %v1128_v57, %v1192_v61 }
 0x2ef   : > { %v1208_v0 = vpop.trf.xlu1 }
 0x2f0   : > { %v1273_v16 = vcombine.low %v1144_v59, %v1208_v0  ;;  %v1255_v20 = vrot.slane %v1248_v9, %v3587_v24  ;;  %v890_v59 = vshrl.u32 %v879_v54, 16 }
 0x2f1   : > { %v1160_v4 = vpop.trf.xlu0 }
 0x2f2   : > { %v1280_v27 = vrot.slane %v1273_v16, %v3587_v24  ;;  %v891_v60 = vpack.i.b16 %v890_v59, %v889_v12 }
 0x2f3   : > { %v1176_v6 = vpop.trf.xlu1 }
 0x2f5   : > { %v1224_v11 = vpop.trf.xlu0 }
 0x2f6   : > { %v1256_v17 = vcombine.low %v1160_v4, %v1224_v11 }
 0x2f7   : > { %v1240_v18 = vpop.trf.xlu1 }
 0x2f8   : > { %v1263_v21 = vrot.slane %v1256_v17, %v3587_v24  ;;  %v1281_v22 = vcombine.low %v1176_v6, %v1240_v18 }
 0x2fa   : > { %v1264_v28 = vcombine.low %v1255_v20, %v1263_v21  ;;  %v1288_v30 = vrot.slane %v1281_v22, %v3587_v24 }
 0x2fc   : > { %v1271_v31 = vrot.slane %v1264_v28, %v3593_v36  ;;  %v1289_v32 = vcombine.low %v1280_v27, %v1288_v30 }
 0x2fe   : > { %v1296_v34 = vrot.slane %v1289_v32, %v3593_v36  ;;  %v1301_v39 = vshrl.u32 %v1271_v31, 16  ;;  %v1272_v48 = vcombine.high %v1271_v31, %v3342_v29 }
 0x300   : > { %v1300_v37 = vpack.i.b16 %v1296_v34, %v1271_v31  ;;  %v1302_v40 = vshrl.u32 %v1296_v34, 16  ;;  %v1297_v46 = vcombine.high %v1296_v34, %v3342_v29  ;;  %v1307_v55 = vshrl.u32 %v1272_v48, 16 }
 0x302   : > { %v1316_v41 = vsel %vm1314_vm3, %v1300_v37, 0  ;;  %v1303_v43 = vpack.i.b16 %v1302_v40, %v1301_v39  ;;  %v1306_v50 = vpack.i.b16 %v1297_v46, %v1272_v48  ;;  %v1308_v53 = vshrl.u32 %v1297_v46, 16 }
 0x303   : > { %3008 = vmatpush3.bf16.msra.mxu1 %v1316_v41 }
 0x304   : > { %3013 = vmatprep.subr.bf16.mxu1 %v3334_v2  ;;  %v1362_v45 = vsel %vm1314_vm3, %v1303_v43, 0  ;;  %v1408_v52 = vsel %vm1314_vm3, %v1306_v50, 0  ;;  %v1309_v57 = vpack.i.b16 %v1308_v53, %v1307_v55 }
 0x306   : > { %3010 = vmatmul.mubr.msk.bf16.vlgmr.msra.gmra.mxu1 %vm1310_vm4, %v882_v44  ;;  %v1454_v58 = vsel %vm1314_vm3, %v1309_v57, 0 }
 0x307   : > { %3014 = vmatpush3.bf16.msra.mxu1 %v1362_v45  ;;  %3015 = vmatprep.mubr.msk.bf16.mxu1 %vm3335_vm1, %v3334_v2 }
 0x308   : > { %3019 = vmatprep.subr.bf16.mxu1 %v3334_v2 }
 0x30b   : > { %v737_v34 = vpop.permute.xlu1 %736 }
 0x30e   : > { %3016 = vmatmul.mubr.msk.bf16.vlgmr.msra.gmra.mxu1 %vm1310_vm4, %v885_v51 }
 0x30f   : > { %3020 = vmatpush3.bf16.msra.mxu1 %v1408_v52  ;;  %3021 = vmatprep.mubr.msk.bf16.mxu1 %vm3335_vm1, %v3334_v2 }
 0x310   : > { %3025 = vmatprep.subr.bf16.mxu1 %v3334_v2 }
 0x316   : > { %3022 = vmatmul.mubr.msk.bf16.vlgmr.msra.gmra.mxu1 %vm1310_vm4, %v888_v8 }
 0x317   : > { %3026 = vmatpush3.bf16.msra.mxu1 %v1454_v58  ;;  %3027 = vmatprep.mubr.msk.bf16.mxu1 %vm3335_vm1, %v3334_v2 }
 0x318   : > { %3037 = vmatprep.subr.bf16.mxu1 %v3334_v2 }
 0x31e   : > { %3028 = vmatmul.mubr.msk.bf16.vlgmr.msra.gmra.mxu1 %vm1310_vm4, %v891_v60 }
 0x31f   : > { %3039 = vmatprep.mubr.msk.bf16.mxu1 %vm3335_vm1, %v3334_v2 }
 0x3c6   : > { %v1352_v61 = vpop.f32.mrf.mxu1 }
 0x3c7   : > { %v1496_v63 = vmul.f32 0.35355338, %v1352_v61 }
 0x3c8   : > { %v3011_v0 = vpop.f32.mrf.mxu1 }
 0x3c9   : > { %v3680_v1 = vadd.f32 %v2936_v62, %v1496_v63 }
 0x3ca   : > { %v1355_v3 = vpop.f32.mrf.mxu1 }
 0x3cb   : > { %v1511_v4 = vsel %vm1310_vm4, %v3680_v1, -inf }
 0x3cc   : > { %1512 = vmax.xlane.f32.xlu0 %v1511_v4  ;;  %v3012_v5 = vpop.f32.mrf.mxu1 }
 0x3ce   : > { %v1398_v6 = vpop.f32.mrf.mxu1 }
 0x3cf   : > { %v1497_v7 = vmul.f32 0.35355338, %v1398_v6 }
 0x3d0   : > { %v3017_v9 = vpop.f32.mrf.mxu1 }
 0x3d1   : > { %v3684_v10 = vadd.f32 %v2936_v62, %v1497_v7 }
 0x3d2   : > { %v1401_v11 = vpop.f32.mrf.mxu1 }
 0x3d3   : > { %v1514_v15 = vsel %vm1310_vm4, %v3684_v10, -inf }
 0x3d4   : > { %1515 = vmax.xlane.f32.xlu1 %v1514_v15  ;;  %v3018_v16 = vpop.f32.mrf.mxu1 }
 0x3d6   : > { %v1444_v17 = vpop.f32.mrf.mxu1 }
 0x3d7   : > { %v1498_v26 = vmul.f32 0.35355338, %v1444_v17 }
 0x3d8   : > { %v3023_v18 = vpop.f32.mrf.mxu1 }
 0x3d9   : > { %v3692_v27 = vadd.f32 %v2936_v62, %v1498_v26 }
 0x3da   : > { %v1447_v19 = vpop.f32.mrf.mxu1 }
 0x3db   : > { %v1517_v30 = vsel %vm1310_vm4, %v3692_v27, -inf }
 0x3dc   : > { %v3024_v20 = vpop.f32.mrf.mxu1 }
 0x3de   : > { %v1490_v21 = vpop.f32.mrf.mxu1 }
 0x3df   : > { %v1499_v28 = vmul.f32 0.35355338, %v1490_v21 }
 0x3e0   : > { %v3029_v22 = vpop.f32.mrf.mxu1 }
 0x3e1   : > { %v3696_v31 = vadd.f32 %v2936_v62, %v1499_v28 }
 0x3e2   : > { %740 = vrot.lane.b32.xlu0 %v3581_v13, %s3343_s21  ;;  %v1493_v23 = vpop.f32.mrf.mxu1  ;;  %v735_v13 = vpop.permute.xlu0 %734 }
 0x3e3   : > { %v1520_v32 = vsel %vm1310_vm4, %v3696_v31, -inf }
 0x3e4   : > { %v3030_v25 = vpop.f32.mrf.mxu1 }
 0x3e5   : > { %738 = vrot.lane.b32.xlu1 %v3583_v14, %s3343_s21  ;;  %s3239_s21 = sshll.u32 %s3347_s23, 4  ;;  %s3240_s21 = int_to_ptr.vmem [resolvable:$false] %s3239_s21 }
 0x3e6   : > { %p3242_p5 = scmp.lt.s32.totalorder %s2738_s29, %s3240_s21 }
 0x401   : > { %1518 = vmax.xlane.f32.xlu0 %v1517_v30 }
 0x409   : > { %1521 = vmax.xlane.f32.xlu1 %v1520_v32 }
 0x455   : > { %v3700_v33 = vpop.xlane.xlu0 %1512 }
 0x456   : > { %v1523_v32 = vsub.f32 %v3680_v1, %v3700_v33 }
 0x459   : > { %v741_v35 = vpop.permute.xlu0 %740 }
 0x45a   : > { %v762_v37 = vcombine.low %v737_v34, %v741_v35  ;;  %v763_v38 = vcombine.high %v737_v34, %v741_v35 }
 0x45c   : > { %v770_v42 = vrot.slane %v762_v37, %v3587_v24  ;;  %v777_v43 = vrot.slane %v763_v38, %v3587_v24 }
 0x45d   : > { %v3702_v14 = vpop.xlane.xlu1 %1515 }
 0x45e   : > { %v1524_v35 = vsub.f32 %v3684_v10, %v3702_v14 }
 0x461   : > { %v739_v39 = vpop.permute.xlu1 %738 }
 0x462   : > { %v746_v40 = vcombine.low %v735_v13, %v739_v39  ;;  %v747_v41 = vcombine.high %v735_v13, %v739_v39 }
 0x464   : > { %v754_v44 = vrot.slane %v746_v40, %v3587_v24  ;;  %v761_v45 = vrot.slane %v747_v41, %v3587_v24 }
 0x466   : > { %v778_v46 = vcombine.low %v754_v44, %v770_v42  ;;  %v779_v47 = vcombine.high %v754_v44, %v770_v42  ;;  %v794_v48 = vcombine.low %v761_v45, %v777_v43  ;;  %v795_v51 = vcombine.high %v761_v45, %v777_v43 }
 0x467   : > { %v1527_v43 = vmul.f32 1.442695, %v1523_v32 }
 0x468   : > { %v786_v49 = vrot.slane %v778_v46, %v3593_v36  ;;  %v793_v50 = vrot.slane %v779_v47, %v3593_v36  ;;  %v802_v55 = vrot.slane %v794_v48, %v3593_v36  ;;  %v809_v58 = vrot.slane %v795_v51, %v3593_v36 }
 0x469   : > { %v1529_v46 = vmul.f32 1.442695, %v1524_v35  ;;  %3184 = vpow2.f32 %v1527_v43 }
 0x46a   : > { %v1559_v52 = vpack.c.bf16 %v786_v49, %v786_v49  ;;  %v810_v53 = vcombine.high %v786_v49, %v3334_v2  ;;  %v811_v54 = vcombine.high %v793_v50, %v3334_v2  ;;  %v812_v8 = vcombine.high %v802_v55, %v3334_v2 }
 0x46b   : > { %v1561_v59 = vpack.c.bf16 %v793_v50, %v793_v50  ;;  %v813_v60 = vcombine.high %v809_v58, %v3334_v2  ;;  %v1563_v61 = vpack.c.bf16 %v802_v55, %v802_v55  ;;  %v1565_v63 = vpack.c.bf16 %v809_v58, %v809_v58 }
 0x46c   : > { %1567 = vxpose.xlu1.c.b16.start.end [1/1] (short) (narrow) %v1559_v52, 16  ;;  %v1560_v56 = vpack.c.bf16 %v810_v53, %v810_v53  ;;  %v1562_v57 = vpack.c.bf16 %v811_v54, %v811_v54  ;;  %v1564_v12 = vpack.c.bf16 %v812_v8, %v812_v8  ;;  %3186 = vpow2.f32 %v1529_v46 }
 0x46d   : > { %v1566_v62 = vpack.c.bf16 %v813_v60, %v813_v60 }
 0x46e   : > { %1583 = vxpose.xlu0.c.b16.start.end [1/1] (short) (narrow) %v1560_v56, 16 }
 0x470   : > { %1615 = vxpose.xlu1.c.b16.start.end [1/1] (short) (narrow) %v1562_v57, 16 }
 0x472   : > { %1599 = vxpose.xlu0.c.b16.start.end [1/1] (short) (narrow) %v1561_v59, 16 }
 0x474   : > { %1647 = vxpose.xlu1.c.b16.start.end [1/1] (short) (narrow) %v1564_v12, 16 }
 0x476   : > { %1631 = vxpose.xlu0.c.b16.start.end [1/1] (short) (narrow) %v1563_v61, 16 }
 0x478   : > { %1679 = vxpose.xlu1.c.b16.start.end [1/1] (short) (narrow) %v1566_v62, 16 }
 0x47a   : > { %1663 = vxpose.xlu0.c.b16.start.end [1/1] (short) (narrow) %v1565_v63, 16 }
 0x48a   : > { %v1519_v3 = vpop.xlane.xlu0 %1518 }
 0x48b   : > { %v1525_v44 = vsub.f32 %v3692_v27, %v1519_v3 }
 0x48d   : > { %v1531_v49 = vmul.f32 1.442695, %v1525_v44 }
 0x48f   : > { %3188 = vpow2.f32 %v1531_v49 }
 0x492   : > { %v1522_v0 = vpop.xlane.xlu1 %1521 }
 0x493   : > { %v1526_v47 = vsub.f32 %v3696_v31, %v1522_v0  ;;  %v3185_v31 = vpop.eup %3184 }
 0x494   : > { %v3187_v55 = vpop.eup %3186  ;;  %v1535_v56 = vsel %vm1310_vm4, %v3185_v31, 0.0 }
 0x495   : > { %v1533_v27 = vmul.f32 1.442695, %v1526_v47  ;;  %v1538_v8 = vsel %vm1310_vm4, %v3187_v55, 0.0 }
 0x497   : > { %3190 = vpow2.f32 %v1533_v27 }
 0x49c   : > { %v3189_v57 = vpop.eup %3188 }
 0x49d   : > { %v1541_v59 = vsel %vm1310_vm4, %v3189_v57, 0.0 }
 0x4a4   : > { %v3191_v58 = vpop.eup %3190 }
 0x4a5   : > { %v1544_v12 = vsel %vm1310_vm4, %v3191_v58, 0.0 }
 0x4ce   : > { %v1575_v4 = vpop.trf.xlu1 }
 0x4d0   : > { %v1591_v5 = vpop.trf.xlu0 }
 0x4d2   : > { %v1623_v6 = vpop.trf.xlu1 }
 0x4d4   : > { %v1607_v7 = vpop.trf.xlu0 }
 0x4d6   : > { %v1655_v9 = vpop.trf.xlu1 }
 0x4d7   : > { %v1729_v15 = vcombine.low %v1591_v5, %v1655_v9 }
 0x4d8   : > { %v1639_v11 = vpop.trf.xlu0 }
 0x4d9   : > { %v1695_v17 = vcombine.low %v1575_v4, %v1639_v11  ;;  %v1736_v20 = vrot.slane %v1729_v15, %v3587_v24 }
 0x4da   : > { %v1687_v16 = vpop.trf.xlu1 }
 0x4db   : > { %v1737_v18 = vcombine.low %v1623_v6, %v1687_v16  ;;  %v1702_v23 = vrot.slane %v1695_v17, %v3587_v24 }
 0x4dc   : > { %v1671_v19 = vpop.trf.xlu0 }
 0x4dd   : > { %v1744_v21 = vrot.slane %v1737_v18, %v3587_v24  ;;  %v1703_v22 = vcombine.low %v1607_v7, %v1671_v19 }
 0x4df   : > { %v1745_v25 = vcombine.low %v1736_v20, %v1744_v21  ;;  %v1710_v26 = vrot.slane %v1703_v22, %v3587_v24  ;;  %v1746_v37 = vcombine.high %v1736_v20, %v1744_v21 }
 0x4e1   : > { %v1711_v28 = vcombine.low %v1702_v23, %v1710_v26  ;;  %v1753_v30 = vrot.slane %v1745_v25, %v3593_v36  ;;  %v1712_v13 = vcombine.high %v1702_v23, %v1710_v26  ;;  %v1760_v48 = vrot.slane %v1746_v37, %v3593_v36 }
 0x4e3   : > { %v1719_v34 = vrot.slane %v1711_v28, %v3593_v36  ;;  %v1768_v38 = vshrl.u32 %v1753_v30, 16  ;;  %v1761_v42 = vcombine.high %v1753_v30, %v3342_v29  ;;  %v1726_v33 = vrot.slane %v1712_v13, %v3593_v36 }
 0x4e4   : > { %v1784_v53 = vshrl.u32 %v1760_v48, 16  ;;  %v1762_v61 = vcombine.high %v1760_v48, %v3342_v29 }
 0x4e5   : > { %v1765_v39 = vpack.i.b16 %v1753_v30, %v1719_v34  ;;  %v1767_v40 = vshrl.u32 %v1719_v34, 16  ;;  %v1727_v41 = vcombine.high %v1719_v34, %v3342_v29  ;;  %v1776_v14 = vshrl.u32 %v1761_v42, 16 }
 0x4e6   : > { %v1783_v51 = vshrl.u32 %v1726_v33, 16  ;;  %v1781_v52 = vpack.i.b16 %v1760_v48, %v1726_v33  ;;  %v1728_v60 = vcombine.high %v1726_v33, %v3342_v29  ;;  %v1792_v0 = vshrl.u32 %v1762_v61, 16 }
 0x4e7   : > { %1795 = vxpose.xlu0.c.b16.start.end [1/1] (short) (narrow) %v1765_v39, 16  ;;  %v1769_v45 = vpack.i.b16 %v1768_v38, %v1767_v40  ;;  %v1775_v1 = vshrl.u32 %v1727_v41, 16  ;;  %v1773_v10 = vpack.i.b16 %v1761_v42, %v1727_v41 }
 0x4e8   : > { %v1785_v54 = vpack.i.b16 %v1784_v53, %v1783_v51  ;;  %v1791_v62 = vshrl.u32 %v1728_v60, 16  ;;  %v1789_v63 = vpack.i.b16 %v1762_v61, %v1728_v60 }
 0x4e9   : > { %1811 = vxpose.xlu1.c.b16.start.end [1/1] (short) (narrow) %v1769_v45, 16  ;;  %v1777_v50 = vpack.i.b16 %v1776_v14, %v1775_v1 }
 0x4ea   : > { %v1793_v3 = vpack.i.b16 %v1792_v0, %v1791_v62 }
 0x4eb   : > { %1827 = vxpose.xlu0.c.b16.start.end [1/1] (short) (narrow) %v1773_v10, 16 }
 0x4ed   : > { %1843 = vxpose.xlu1.c.b16.start.end [1/1] (short) (narrow) %v1777_v50, 16 }
 0x4ef   : > { %1859 = vxpose.xlu0.c.b16.start.end [1/1] (short) (narrow) %v1781_v52, 16 }
 0x4f1   : > { %1875 = vxpose.xlu1.c.b16.start.end [1/1] (short) (narrow) %v1785_v54, 16 }
 0x4fc   : > { %1536 = vadd.xlane.f32.xlu0 %v1535_v56 }
 0x4fe   : > { %1539 = vadd.xlane.f32.xlu1 %v1538_v8 }
 0x500   : > { %1542 = vadd.xlane.f32.xlu0 %v1541_v59 }
 0x502   : > { %1545 = vadd.xlane.f32.xlu1 %v1544_v12 }
 0x52d   : > { %1891 = vxpose.xlu0.c.b16.start.end [1/1] (short) (narrow) %v1789_v63, 16 }
 0x52f   : > { %1907 = vxpose.xlu1.c.b16.start.end [1/1] (short) (narrow) %v1793_v3, 16 }
 0x549   : > { %v1803_v4 = vpop.trf.xlu0 }
 0x54b   : > { %v1819_v5 = vpop.trf.xlu1 }
 0x54d   : > { %v1835_v6 = vpop.trf.xlu0 }
 0x54f   : > { %v1851_v7 = vpop.trf.xlu1 }
 0x551   : > { %v1867_v9 = vpop.trf.xlu0 }
 0x552   : > { %v1923_v22 = vcombine.low %v1803_v4, %v1867_v9 }
 0x553   : > { %v1883_v11 = vpop.trf.xlu1 }
 0x554   : > { %v1948_v20 = vcombine.low %v1819_v5, %v1883_v11  ;;  %v1930_v35 = vrot.slane %v1923_v22, %v3587_v24 }
 0x556   : > { %v1955_v30 = vrot.slane %v1948_v20, %v3587_v24 }
 0x585   : > { %v1537_v15 = vpop.xlane.xlu0 %1536 }
 0x586   : > { %3192 = vrcp.f32 %v1537_v15 }
 0x587   : > { %v1540_v16 = vpop.xlane.xlu1 %1539 }
 0x588   : > { %3194 = vrcp.f32 %v1540_v16 }
 0x589   : > { %v1543_v17 = vpop.xlane.xlu0 %1542 }
 0x58a   : > { %3196 = vrcp.f32 %v1543_v17 }
 0x58b   : > { %v1546_v18 = vpop.xlane.xlu1 %1545 }
 0x58c   : > { %3198 = vrcp.f32 %v1546_v18 }
 0x58f   : > { %v1899_v19 = vpop.trf.xlu0 }
 0x590   : > { %v1931_v21 = vcombine.low %v1835_v6, %v1899_v19 }
 0x591   : > { %v1915_v23 = vpop.trf.xlu1 }
 0x592   : > { %v1956_v25 = vcombine.low %v1851_v7, %v1915_v23  ;;  %v1938_v28 = vrot.slane %v1931_v21, %v3587_v24 }
 0x593   : > { %v3193_v26 = vpop.eup %3192 }
 0x594   : > { %v1963_v32 = vrot.slane %v1956_v25, %v3587_v24  ;;  %v1551_v13 = vmul.f32 %v3193_v26, %v3185_v31  ;;  %v1939_v41 = vcombine.low %v1930_v35, %v1938_v28 }
 0x595   : > { %v3195_v34 = vpop.eup %3194 }
 0x596   : > { %v1964_v37 = vcombine.low %v1955_v30, %v1963_v32  ;;  %v1555_v38 = vpack.c.bf16 %v1551_v13, %v1551_v13  ;;  %v1552_v39 = vmul.f32 %v3195_v34, %v3187_v55  ;;  %v1946_v33 = vrot.slane %v1939_v41, %v3593_v36  ;;  %v3176_v34 = vld [vmem:[%s3528_s10 + $0x8] sm:$0xff]  }
 0x597   : > { %v3197_v40 = vpop.eup %3196 }
 0x598   : > { %v1989_v42 = vsel %vm1310_vm4, %v1555_v38, 0  ;;  %v1971_v44 = vrot.slane %v1964_v37, %v3593_v36  ;;  %v1556_v45 = vpack.c.bf16 %v1552_v39, %v1552_v39  ;;  %v1553_v1 = vmul.f32 %v3197_v40, %v3189_v57 }
 0x599   : > { %v3199_v43 = vpop.eup %3198  ;;  %3032 = vmatpush3.bf16.xpose.msra.mxu0 %v1989_v42  ;;  %v1976_v49 = vshrl.u32 %v1946_v33, 16  ;;  %v1947_v53 = vcombine.high %v1946_v33, %v3342_v29 }
 0x59a   : > { %3043 = vmatprep.subr.bf16.mxu0 %v3334_v2  ;;  %v2035_v46 = vsel %vm1310_vm4, %v1556_v45, 0  ;;  %v1554_v47 = vmul.f32 %v3199_v43, %v3191_v58  ;;  %v1557_v10 = vpack.c.bf16 %v1553_v1, %v1553_v1  ;;  %v1977_v14 = vshrl.u32 %v1971_v44, 16 }
 0x59b   : > { %3038 = vmatpush3.bf16.xpose.msra.mxu1 %v2035_v46  ;;  %v1975_v48 = vpack.i.b16 %v1971_v44, %v1946_v33  ;;  %v1972_v27 = vcombine.high %v1971_v44, %v3342_v29  ;;  %v1982_v56 = vshrl.u32 %v1947_v53, 16  ;;  %v3177_v44 = vld [vmem:[%s3528_s10] sm:$0xff]   ;;  %s3344_s10 = smov 16  }
 0x59c   : > { %3049 = vmatprep.subr.bf16.mxu1 %v3334_v2  ;;  %v1558_v50 = vpack.c.bf16 %v1554_v47, %v1554_v47  ;;  %v2081_v51 = vsel %vm1310_vm4, %v1557_v10, 0  ;;  %v1978_v52 = vpack.i.b16 %v1977_v14, %v1976_v49 }
 0x59d   : > { %v1983_v31 = vshrl.u32 %v1972_v27, 16  ;;  %v1981_v55 = vpack.i.b16 %v1972_v27, %v1947_v53 }
 0x59e   : > { %v2127_v54 = vsel %vm1310_vm4, %v1558_v50, 0 }
 0x59f   : > { %v1984_v57 = vpack.i.b16 %v1983_v31, %v1982_v56 }
 0x5a0   : > { %3034 = vmatmul.mubr.msk.bf16.vlgmr.msra.gmra.mxu0 %vm1310_vm4, %v1975_v48 }
 0x5a1   : > { %3044 = vmatpush3.bf16.xpose.msra.mxu0 %v2081_v51  ;;  %3045 = vmatprep.mubr.msk.bf16.mxu0 %vm3335_vm1, %v3334_v2 }
 0x5a2   : > { %3055 = vmatprep.subr.bf16.mxu0 %v3334_v2  ;;  %3040 = vmatmul.mubr.msk.bf16.vlgmr.msra.gmra.mxu1 %vm1310_vm4, %v1978_v52 }
 0x5a3   : > { %3050 = vmatpush3.bf16.xpose.msra.mxu1 %v2127_v54  ;;  %3051 = vmatprep.mubr.msk.bf16.mxu1 %vm3335_vm1, %v3334_v2 }
 0x5a4   : > { %3063 = vmatprep.subr.bf16.mxu1 %v3334_v2 }
 0x5a8   : > { %3046 = vmatmul.mubr.msk.bf16.vlgmr.msra.gmra.mxu0 %vm1310_vm4, %v1981_v55 }
 0x5a9   : > { %3059 = vmatprep.mubr.msk.bf16.mxu0 %vm3335_vm1, %v3334_v2  ;;  %3056 = vmatpush3.bf16.msra.mxu0 %v3176_v34  ;;  %v2949_v34 = vld [vmem:[%s489_s24] ss:$0 sm:$0xff]  ;;  %s3912_s24 = sld [smem:[#allocation19_spill]] }
 0x5aa   : > { %3052 = vmatmul.mubr.msk.bf16.vlgmr.msra.gmra.mxu1 %vm1310_vm4, %v1984_v57  ;;  %3057 = vmatprep.subr.bf16.mxu0 %v3334_v2 }
 0x5ab   : > { %3067 = vmatprep.mubr.msk.bf16.mxu1 %vm3335_vm1, %v3334_v2 }
 0x5ad   : > { %3058 = vmatpush3.bf16.msra.mxu0 %v3177_v44 }
 0x5ae   : > { %3071 = vmatprep.subr.bf16.mxu0 %v3334_v2 }
 0x5af   : > { %s2724_s27 = scalar_lea.sflag [#allocation4], %s3912_s24 }
 0x660   : > { %v2025_v29 = vpop.f32.mrf.mxu0 }
 0x661   : > { %2169 = vxpose.xlu0.b32.start.end [1/1] (short) (narrow) %v2025_v29, 8 }
 0x662   : > { %v3035_v8 = vpop.f32.mrf.mxu0  ;;  %v2071_v58 = vpop.f32.mrf.mxu1 }
 0x663   : > { %2201 = vxpose.xlu1.b32.start.end [1/1] (short) (narrow) %v2071_v58, 8  ;;  %v2943_v58 = vld [vmem:[%s3549_s28] ss:$0 sm:$0xff] }
 0x664   : > { %v2028_v59 = vpop.f32.mrf.mxu0  ;;  %v3041_v12 = vpop.f32.mrf.mxu1 }
 0x666   : > { %v3036_v60 = vpop.f32.mrf.mxu0  ;;  %v2074_v61 = vpop.f32.mrf.mxu1 }
 0x667   : > { %v3206_v61 = vld [vmem:[%s3551_s2] sm:$0xff] }
 0x668   : > { %v2117_v62 = vpop.f32.mrf.mxu0  ;;  %v3042_v63 = vpop.f32.mrf.mxu1 }
 0x669   : > { %2233 = vxpose.xlu0.b32.start.end [1/1] (short) (narrow) %v2117_v62, 8 }
 0x66a   : > { %v3047_v0 = vpop.f32.mrf.mxu0  ;;  %v2163_v3 = vpop.f32.mrf.mxu1 }
 0x66c   : > { %v2120_v4 = vpop.f32.mrf.mxu0  ;;  %v3053_v5 = vpop.f32.mrf.mxu1 }
 0x66d   : > { %2265 = vxpose.xlu0.b32.start.end [1/1] (short) (narrow) %v2163_v3, 8 }
 0x66e   : > { %v3048_v6 = vpop.f32.mrf.mxu0  ;;  %v2166_v7 = vpop.f32.mrf.mxu1 }
 0x670   : > { %v3054_v9 = vpop.f32.mrf.mxu1 }
 0x6dd   : > { %v2185_v11 = vpop.trf.xlu0 }
 0x6df   : > { %v2217_v16 = vpop.trf.xlu1 }
 0x6e5   : > { %v2249_v15 = vpop.trf.xlu0 }
 0x6e6   : > { %v2297_v17 = vcombine.low %v2185_v11, %v2249_v15  ;;  %v2298_v18 = vcombine.high %v2185_v11, %v2249_v15  ;;  %v3178_v11 = vld [vmem:[%s3533_s26 + $0x8] sm:$0xff]   ;;  %v3179_v15 = vld [vmem:[%s3533_s26] sm:$0xff]  }
 0x6e7   : > { %3064 = vmatpush3.bf16.msra.mxu1 %v3178_v11 }
 0x6e8   : > { %v2305_v22 = vrot.slane %v2297_v17, %v3587_v24  ;;  %v2312_v23 = vrot.slane %v2298_v18, %v3587_v24  ;;  %3065 = vmatprep.subr.bf16.mxu1 %v3334_v2 }
 0x6e9   : > { %v2281_v19 = vpop.trf.xlu0 }
 0x6ea   : > { %v2313_v20 = vcombine.low %v2217_v16, %v2281_v19  ;;  %v2314_v21 = vcombine.high %v2217_v16, %v2281_v19 }
 0x6eb   : > { %3066 = vmatpush3.bf16.msra.mxu1 %v3179_v15 }
 0x6ec   : > { %v2321_v25 = vrot.slane %v2313_v20, %v3587_v24  ;;  %v2328_v26 = vrot.slane %v2314_v21, %v3587_v24  ;;  %v2947_v20 = vld [vmem:[%s3549_s28 + $0x1] ss:$0 sm:$0xff] }
 0x6ee   : > { %v2329_v28 = vcombine.low %v2305_v22, %v2321_v25  ;;  %v2330_v30 = vcombine.high %v2305_v22, %v2321_v25  ;;  %v2345_v32 = vcombine.low %v2312_v23, %v2328_v26  ;;  %v2346_v13 = vcombine.high %v2312_v23, %v2328_v26  ;;  %v2948_v22 = vld [vmem:[%s3549_s28 + $0x2] ss:$0 sm:$0xff] }
 0x6f0   : > { %v2337_v35 = vrot.slane %v2329_v28, %v3593_v36  ;;  %v2344_v37 = vrot.slane %v2330_v30, %v3593_v36  ;;  %v2353_v38 = vrot.slane %v2345_v32, %v3593_v36  ;;  %v2360_v39 = vrot.slane %v2346_v13, %v3593_v36  ;;  %v3180_v28 = vld [vmem:[%s3544_s0 + $0x18] sm:$0xff]   ;;  %v3181_v30 = vld [vmem:[%s3544_s0 + $0x10] sm:$0xff]   ;;  %v3182_v32 = vld [vmem:[%s3544_s0 + $0x8] sm:$0xff]  }
 0x6f1   : > { %v3183_v13 = vld [vmem:[%s3544_s0] sm:$0xff]   ;;  %s2962_s0 = sshll.u32 %s3319_s13, 7  ;;  %s3241_s13 = scalar_lea.vmem %s3240_s21, 256 }
 0x6f2   : > { %v2365_v40 = vcombine.low %v2337_v35, %v2344_v37  ;;  %v2941_v41 = vcombine.high %v2337_v35, %v2344_v37  ;;  %v2381_v42 = vcombine.low %v2353_v38, %v2360_v39  ;;  %v2942_v43 = vcombine.high %v2353_v38, %v2360_v39  ;;  %s2735_s16 = scalar_lea.hbm %s3914_s15, %s2962_s0  ;;  %p3243_p6 = scmp.lt.s32.totalorder %s3241_s13, %s3235_s18 }
 0x6f4   : > { %v2372_v45 = vrot.slane %v2365_v40, %v3587_v24  ;;  %v2380_v1 = vrot.slane %v2941_v41, %v3587_v24  ;;  %v2388_v33 = vrot.slane %v2381_v42, %v3587_v24  ;;  %v2396_v46 = vrot.slane %v2942_v43, %v3587_v24  ;;  %p3244_p7 = por %p3243_p6, %p3242_p5 }
 0x6f6   : > { %v2398_v47 = vcombine.high %v2372_v45, %v2380_v1  ;;  %v2414_v10 = vcombine.high %v2388_v33, %v2396_v46  ;;  %v2397_v14 = vcombine.low %v2372_v45, %v2380_v1  ;;  %v2413_v48 = vcombine.low %v2388_v33, %v2396_v46  ;;  %v2953_v1 = vld [vmem:[%s3549_s28 + $0x3] ss:$0 sm:$0xff]  ;;  %p3245_p8 = pnand %p3244_p7, %p3238_p4 }
 0x6f8   : > { %v2412_v49 = vrot.slane %v2398_v47, %v3593_v36  ;;  %v2428_v50 = vrot.slane %v2414_v10, %v3593_v36  ;;  %v2405_v51 = vrot.slane %v2397_v14, %v3593_v36  ;;  %v2421_v27 = vrot.slane %v2413_v48, %v3593_v36 }
 0x6fa   : > { %v2431_v52 = vcombine.low %v2412_v49, %v2428_v50  ;;  %v2430_v53 = vcombine.high %v2405_v51, %v2421_v27  ;;  %v2429_v54 = vcombine.low %v2405_v51, %v2421_v27  ;;  %v2432_v24 = vcombine.high %v2412_v49, %v2428_v50 }
 0x6fc   : > { %2438 = vrot.lane.b32.xlu0 %v2431_v52, %s3344_s10  ;;  %2434 = vrot.lane.b32.xlu1 %v2430_v53, %s3345_s9 }
 0x700   : > { %2442 = vrot.lane.b32.xlu1 %v2432_v24, %s3346_s19 }
 0x76e   : > { %v2435_v31 = vpop.permute.xlu1 %2434  ;;  %v2439_v55 = vpop.permute.xlu0 %2438 }
 0x76f   : > { %v2445_v56 = vsel %vm1310_vm4, %v2429_v54, %v2435_v31 }
 0x770   : > { %v2447_v36 = vsel %vm2446_vm5, %v2445_v56, %v2439_v55  ;;  %v2959_v56 = vld [vmem:[%s3549_s28 + $0x4] ss:$0 sm:$0xff] }
 0x772   : > { %v2443_v57 = vpop.permute.xlu1 %2442 }
 0x773   : > { %v2449_v29 = vsel %vm2448_vm6, %v2447_v36, %v2443_v57  ;;  %v2960_v36 = vld [vmem:[%s3549_s28 + $0x5] ss:$0 sm:$0xff] }
 0x774   : > { %v2450_v8 = vpack.c.bf16 %v2449_v29, %v2449_v29 }
 0x776   : > { %3060 = vmatmul.mubr.msk.bf16.vlgmr.msra.gmra.mxu0 %vm532_vm2, %v2450_v8 }
 0x777   : > { %3079 = vmatprep.mubr.msk.bf16.mxu0 %vm3335_vm1, %v3334_v2  ;;  %3072 = vmatpush3.bf16.msra.mxu0 %v3180_v28 }
 0x778   : > { %3073 = vmatprep.subr.bf16.mxu0 %v3334_v2 }
 0x77b   : > { %3074 = vmatpush3.bf16.msra.mxu0 %v3181_v30 }
 0x77c   : > { %3075 = vmatprep.subr.bf16.mxu0 %v3334_v2 }
 0x77f   : > { %3076 = vmatpush3.bf16.msra.mxu0 %v3182_v32 }
 0x780   : > { %3077 = vmatprep.subr.bf16.mxu0 %v3334_v2 }
 0x783   : > { %3078 = vmatpush3.bf16.msra.mxu0 %v3183_v13 }
 0x836   : > { %v2509_v59 = vpop.f32.mrf.mxu0 }
 0x837   : > { %v2510_v12 = vadd.f32 %v2943_v58, %v2509_v59 }
 0x838   : > { %v3061_v60 = vpop.f32.mrf.mxu0 }
 0x839   : > { %v2515_v62 = vadd.f32 %v3206_v61, %v2510_v12 }
 0x83a   : > { %v2512_v63 = vpop.f32.mrf.mxu0 }
 0x83b   : > { %v2518_v0 = vsel %vm532_vm2, %v2515_v62, 0.0 }
 0x83c   : > { %2519 = vadd.xlane.f32.xlu1 %v2518_v0  ;;  %v3062_v3 = vpop.f32.mrf.mxu0 }
 0x8c5   : > { %v2520_v4 = vpop.xlane.xlu1 %2519 }
 0x8c6   : > { %v2522_v5 = vmul.f32 0.03125, %v2520_v4 }
 0x8c8   : > { %v2523_v6 = vsub.f32 %v2515_v62, %v2522_v5 }
 0x8ca   : > { %v2524_v7 = vmul.f32 %v2523_v6, %v2523_v6 }
 0x8cc   : > { %v2525_v9 = vsel %vm532_vm2, %v2524_v7, 0.0 }
 0x8cd   : > { %2526 = vadd.xlane.f32.xlu0 %v2525_v9 }
 0x956   : > { %v2527_v16 = vpop.xlane.xlu0 %2526 }
 0x957   : > { %v2528_v17 = vmul.f32 0.03125, %v2527_v16 }
 0x959   : > { %v2529_v18 = vadd.f32 1e-05, %v2528_v17 }
 0x95b   : > { %3200 = vrsqrt.f32 %v2529_v18 }
 0x968   : > { %v3201_v19 = vpop.eup %3200 }
 0x969   : > { %v2531_v21 = vmul.f32 %v3201_v19, %v2523_v6 }
 0x96b   : > { %v2536_v23 = vmul.f32 %v2947_v20, %v2531_v21 }
 0x96d   : > { %v2541_v25 = vadd.f32 %v2948_v22, %v2536_v23 }
 0x96f   : > { %v2542_v26 = vpack.c.bf16 %v2541_v25, %v2541_v25 }
 0x971   : > { %3068 = vmatmul.mubr.msk.bf16.vlgmr.msra.gmra.mxu1 %vm532_vm2, %v2542_v26 }
 0xa31   : > { %v2603_v35 = vpop.f32.mrf.mxu1 }
 0xa32   : > { %v2604_v37 = vadd.f32 %v2949_v34, %v2603_v35 }
 0xa33   : > { %v3069_v38 = vpop.f32.mrf.mxu1 }
 0xa34   : > { %v2610_v39 = vmul.f32 0.70710677, %v2604_v37  ;;  %v2609_v43 = vmul.f32 0.5, %v2604_v37 }
 0xa35   : > { %v2606_v40 = vpop.f32.mrf.mxu1 }
 0xa36   : > { %3202 = verf.f32 %v2610_v39 }
 0xa37   : > { %v3070_v41 = vpop.f32.mrf.mxu1 }
 0xa43   : > { %v3203_v42 = vpop.eup %3202 }
 0xa44   : > { %v2612_v44 = vadd.f32 1.0, %v3203_v42 }
 0xa46   : > { %v2613_v45 = vmul.f32 %v2612_v44, %v2609_v43 }
 0xa48   : > { %v2614_v2 = vpack.c.bf16 %v2613_v45, %v2613_v45 }
 0xa4a   : > { %3080 = vmatmul.mubr.msk.bf16.vlgmr.msra.gmra.mxu0 %vm2652_vm7, %v2614_v2 }
 0xb0a   : > { %v2690_v33 = vpop.f32.mrf.mxu0 }
 0xb0b   : > { %v2691_v46 = vadd.f32 %v2953_v1, %v2690_v33 }
 0xb0c   : > { %v3081_v47 = vpop.f32.mrf.mxu0 }
 0xb0d   : > { %v2696_v10 = vadd.f32 %v2691_v46, %v2541_v25 }
 0xb0e   : > { %v2693_v14 = vpop.f32.mrf.mxu0 }
 0xb0f   : > { %v2699_v48 = vsel %vm532_vm2, %v2696_v10, 0.0 }
 0xb10   : > { %2700 = vadd.xlane.f32.xlu1 %v2699_v48  ;;  %v3082_v49 = vpop.f32.mrf.mxu0 }
 0xb99   : > { %v2701_v50 = vpop.xlane.xlu1 %2700 }
 0xb9a   : > { %v2702_v51 = vmul.f32 0.03125, %v2701_v50 }
 0xb9c   : > { %v2703_v27 = vsub.f32 %v2696_v10, %v2702_v51 }
 0xb9e   : > { %v2704_v52 = vmul.f32 %v2703_v27, %v2703_v27 }
 0xba0   : > { %v2705_v53 = vsel %vm532_vm2, %v2704_v52, 0.0 }
 0xba1   : > { %2706 = vadd.xlane.f32.xlu0 %v2705_v53 }
 0xc2a   : > { %v2707_v54 = vpop.xlane.xlu0 %2706 }
 0xc2b   : > { %v2708_v24 = vmul.f32 0.03125, %v2707_v54 }
 0xc2d   : > { %v2709_v31 = vadd.f32 1e-05, %v2708_v24 }
 0xc2f   : > { %3204 = vrsqrt.f32 %v2709_v31 }
 0xc3c   : > { %v3205_v55 = vpop.eup %3204 }
 0xc3d   : > { %v2711_v57 = vmul.f32 %v3205_v55, %v2703_v27 }
 0xc3f   : > { %v2716_v29 = vmul.f32 %v2959_v56, %v2711_v57 }
 0xc41   : > { %v2721_v8 = vadd.f32 %v2960_v36, %v2716_v29 }
 0xc43   : > { %2722 = vst.msk [vmem:[%s3551_s2] sm:$0xff] %vm532_vm2, %v2721_v8 }
 0xc44   : > { %3248 = shalt.err (!%p3245_p8)
}
 0xc45   : > { %s3249_s28 = scalar_lea.hbm %s2735_s16, 128  ;;  %s3253_s20 = scalar_lea.hbm %s3915_s22, 256 }
 0xc46   : > { %p3250_p12 = scmp.ne.s32.totalorder %s2735_s16, %s3249_s28  ;;  %p3254_p0 = scmp.lt.s32.totalorder %s2735_s16, %s3915_s22 }
 0xc47   : > { %p3255_p11 = scmp.lt.s32.totalorder %s3253_s20, %s3249_s28 }
 0xc48   : > { %p3251_p3 = pnand %p3250_p12, %p3461_p10 }
 0xc49   : > { %p3256_p9 = por %p3255_p11, %p3254_p0 }
 0xc4a   : > { %p3252_p13 = pneg %p3251_p3 }
 0xc4c   : > { %p3257_p1 = pnand %p3256_p9, %p3252_p13 }
 0xc4e   : > { %3260 = shalt.err (!%p3257_p1)
}
 0xc4f   : > { %3085 = dma.vmem_to_hbm [thread:$0]  (%p3461_p10), %s2738_s29, 128, %s2735_s16, %s2724_s27  }
 0xc50 PF: > { %s3916_s9 = sld [smem:[#allocation13_spill]] }
 0xc51   : > { %s3917_s19 = sld [smem:[#allocation8_spill]] }
 0xc52   : > { %s3918_s26 = sld [smem:[#allocation17_spill]] }
 0xc56   : > { %p3096_p2 = scmp.ge.s32.totalorder %s3916_s9, 2 }
 0xc57   : > { %s2749_s17 = sand.u32 1, %s3917_s19  }
 0xc58   : > { %p3919_p4 = scmp.ne.s32.totalorder %s3918_s26, 0  ;;  %s2750_s24 = scalar_lea.sflag [#allocation4], %s2749_s17 }
 0xc5a   : > { %p3092_p5 = pnand %p3096_p2, %p3919_p4 }
 0xc5c   : > { %p3093_p6 = pneg %p3092_p5 }
 0xc5e   : > { %3298 = dma.done.wait (%p3093_p6), %s2750_s24, 128  }
 0xc5f   : > { %3300 = vsyncadd (%p3093_p6), %s2750_s24, 4294967168  ;;  %s25_s16 = sadd.s32 1, %s3916_s9   ;;  %s3920_s30 = sld [smem:[#allocation9_spill]] }
 0xc60   : > { %p22_p7 = scmp.ge.s32.totalorder %s25_s16, 6   ;;  %s3921_s10 = sld [smem:[#allocation10_spill]] }
 0xc61   : > { %s3922_s11 = sld [smem:[#allocation18_spill]] }
 0xc62   : > { %s3923_s12 = sld [smem:[#allocation11_spill]]  ;;  %24 = sbr.rel (!%p22_p7) target bundleno = 11 (0xb), region = 129 }
 0xc63   : > { %s3924_s13 = sld [smem:[#allocation12_spill]] }
 0xc64   : > { %s3925_s14 = sld [smem:[#allocation14_spill]] }
 0xc65   : > { %s3926_s15 = sld [smem:[#allocation15_spill]] }
 0xc67   :  { %2755 = vsyncpa [#allocation3], 1 }
 0xc68   :  { %2757 = vsyncpa [#allocation3 + $0x1], 1 }
 0xc69   :  { %2758 = vsyncpa [#allocation4], 1 }
 0xc6a   :  { %2760 = vsyncpa [#allocation4 + $0x1], 1 }

</bundles_post_ra>
